<compile_context>
chip_gen: v6e
topology: v6e:2x2x1
jax: 0.10.0
libtpu: 0.0.40
codegen_flags: <defaults>
</compile_context>

<pallas_src>
import functools

import jax
import jax.numpy as jnp
import numpy as np
from jax import lax
from jax.experimental import pallas as pl
from jax.experimental.pallas import tpu as pltpu


# ----------------------------- in-kernel math -----------------------------

def _layernorm(x, gamma, beta, eps=1e-5):
    mu = jnp.mean(x, axis=-1, keepdims=True)
    var = jnp.mean((x - mu) ** 2, axis=-1, keepdims=True)   # biased var (torch LN)
    return (x - mu) * lax.rsqrt(var + eps) * gamma + beta


_SQRT_2_OVER_PI = 0.7978845608028654


def _gelu_tanh(x):
    # tanh approximation of torch.nn.GELU()'s exact (erf) form; max abs
    # deviation ~3e-3, inside the test tolerance; tanh uses the EUP slot.
    return 0.5 * x * (1.0 + jnp.tanh(_SQRT_2_OVER_PI * (x + 0.044715 * x * x * x)))


# ------------------------------- the kernel -------------------------------

def encoder_kernel(x_ref,
                   wq_ref, bq_ref, wk_ref, bk_ref, wv_ref, bv_ref,
                   wp_ref, bp_ref,
                   g1_ref, be1_ref,
                   w1_ref, b1_ref, w2_ref, b2_ref,
                   g2_ref, be2_ref,
                   out_ref,
                   cat_ref,                     # VMEM scratch (S, D) bf16
                   *, heads):
    x = x_ref[...]                              # (S, D) f32, one batch element
    S, D = x.shape
    d = D // heads
    xb = x.astype(jnp.bfloat16)

    # ---- fused full-width Q/K/V projections (one (S,D)@(D,D) matmul each) ----
    # 1/sqrt(d) is already folded into wq/bq (see prepare_params).
    qb = (jnp.dot(xb, wq_ref[...], preferred_element_type=jnp.float32)
          + bq_ref[...]).astype(jnp.bfloat16)
    kb = (jnp.dot(xb, wk_ref[...], preferred_element_type=jnp.float32)
          + bk_ref[...]).astype(jnp.bfloat16)
    vb = (jnp.dot(xb, wv_ref[...], preferred_element_type=jnp.float32)
          + bv_ref[...]).astype(jnp.bfloat16)

    # ---- head-major layout built ONCE per grid step: (H, S, d) ----
    qh = jnp.stack([qb[:, h * d:(h + 1) * d] for h in range(heads)], axis=0)
    kh = jnp.stack([kb[:, h * d:(h + 1) * d] for h in range(heads)], axis=0)
    vh = jnp.stack([vb[:, h * d:(h + 1) * d] for h in range(heads)], axis=0)

    # ---- batched scores / softmax / PV over all heads at once ----
    s = jnp.einsum('hqe,hke->hqk', qh, kh,
                   preferred_element_type=jnp.float32)       # (H, Sq, Sk) f32
    # torch.softmax(..., dim=1) on (B, Sq, Sk): normalize over the *query* axis.
    m = jnp.max(s, axis=1, keepdims=True)
    e = jnp.exp(s - m)
    p = e * pl.reciprocal(jnp.sum(e, axis=1, keepdims=True), approx=True)
    o = jnp.einsum('hqk,hke->hqe', p.astype(jnp.bfloat16), vh,
                   preferred_element_type=jnp.float32)       # (H, S, d) f32

    # ---- merge heads lane-dense into VMEM scratch (no concatenate) ----
    for h in range(heads):
        cat_ref[:, h * d:(h + 1) * d] = o[h].astype(jnp.bfloat16)

    # ---- single full-width output projection over the merged heads ----
    attn = jnp.dot(cat_ref[...], wp_ref[...],
                   preferred_element_type=jnp.float32) + bp_ref[...]

    # ---- residual + LayerNorm1 ----
    x1 = _layernorm(x + attn, g1_ref[...], be1_ref[...])

    # ---- MLP: Linear -> GELU -> Linear -> GELU ----
    h1 = _gelu_tanh(jnp.dot(x1.astype(jnp.bfloat16), w1_ref[...],
                            preferred_element_type=jnp.float32) + b1_ref[...])
    h2 = _gelu_tanh(jnp.dot(h1.astype(jnp.bfloat16), w2_ref[...],
                            preferred_element_type=jnp.float32) + b2_ref[...])

    # ---- residual + LayerNorm2 ----
    out_ref[...] = _layernorm(x1 + h2, g2_ref[...], be2_ref[...]).astype(out_ref.dtype)


# ------------------------------- the wrapper -------------------------------

def prepare_params(params, heads=8):
    """One-time prep: fold 1/sqrt(d) into Wq/bq and cast matmul weights to bf16."""
    (Wq, bq, Wk, bk, Wv, bv, Wp, bp, g1, be1, W1, b1, W2, b2, g2, be2) = params
    D = Wq.shape[0]
    inv_norm = 1.0 / float((D // heads) ** 0.5)
    bf = lambda a: a.astype(jnp.bfloat16)
    return (bf(Wq * inv_norm), bq * inv_norm,
            bf(Wk), bk, bf(Wv), bv, bf(Wp), bp,
            g1, be1, bf(W1), b1, bf(W2), b2, g2, be2)


def encoder_pallas(x, prepared_params, heads=8):
    """x: (B, S, D) f32. prepared_params: output of prepare_params (bf16 weights)."""
    B, S, D = x.shape
    x2d = x.reshape(B * S, D)

    def resident(a):                               # full array, same block each step
        zeros = (0,) * a.ndim
        return pl.BlockSpec(a.shape, lambda b: zeros)

    in_specs = ([pl.BlockSpec((S, D), lambda b: (b, 0))]
                + [resident(a) for a in prepared_params])

    out2d = pl.pallas_call(
        functools.partial(encoder_kernel, heads=heads),
        out_shape=jax.ShapeDtypeStruct((B * S, D), x.dtype),
        grid=(B,),
        in_specs=in_specs,
        out_specs=pl.BlockSpec((S, D), lambda b: (b, 0)),
        scratch_shapes=[pltpu.VMEM((S, D), jnp.bfloat16)],
        compiler_params=pltpu.CompilerParams(
            dimension_semantics=("parallel",)),
    )(x2d, *prepared_params)
    return out2d.reshape(B, S, D)


# ------------------------------ pure-JAX reference ------------------------------

def encoder_reference(x, params, heads=8):
    (Wq, bq, Wk, bk, Wv, bv, Wp, bp, g1, be1, W1, b1, W2, b2, g2, be2) = params
    B, S, D = x.shape
    d = D // heads
    hi = lax.Precision.HIGHEST

    def gelu(v):                                   # exact (erf) GELU, as torch.nn.GELU()
        return 0.5 * v * (1.0 + jax.scipy.special.erf(v / np.sqrt(2.0)))

    def ln(v, g, b, eps=1e-5):
        mu = jnp.mean(v, -1, keepdims=True)
        var = jnp.mean((v - mu) ** 2, -1, keepdims=True)
        return (v - mu) / jnp.sqrt(var + eps) * g + b

    q = jnp.einsum("bsd,de->bse", x, Wq, precision=hi) + bq
    k = jnp.einsum("bsd,de->bse", x, Wk, precision=hi) + bk
    v = jnp.einsum("bsd,de->bse", x, Wv, precision=hi) + bv
    heads_out = []
    for h in range(heads):
        c = slice(h * d, (h + 1) * d)
        s = jnp.einsum("bqe,bke->bqk", q[..., c], k[..., c], precision=hi) / (d ** 0.5)
        p = jax.nn.softmax(s, axis=1)              # dim=1, as in the PyTorch code
        heads_out.append(jnp.einsum("bqk,bke->bqe", p, v[..., c], precision=hi))
    cat = jnp.concatenate(heads_out, axis=-1)      # (B, S, D)
    attn = jnp.einsum("bsd,de->bse", cat, Wp, precision=hi) + bp
    x1 = ln(x + attn, g1, be1)
    h1 = gelu(jnp.einsum("bsd,de->bse", x1, W1, precision=hi) + b1)
    h2 = gelu(jnp.einsum("bsd,de->bse", h1, W2, precision=hi) + b2)
    return ln(x1 + h2, g2, be2)


# ------------------------------------ main ------------------------------------

if __name__ == "__main__":
    # Small shapes consistent with the module structure (dim divisible by heads);
    # D=128 keeps every matmul output lane-dense.
    B, S, D, H = 2, 16, 128, 8
    d = D // H

    key = jax.random.PRNGKey(0)
    ks = jax.random.split(key, 16)
    sc = 0.05

    # Fused (in, out) layout: columns [h*d:(h+1)*d] of Wq/Wk/Wv belong to head h.
    Wq = jax.random.normal(ks[0], (D, D), jnp.float32) * sc
    bq = jax.random.normal(ks[1], (1, D), jnp.float32) * sc
    Wk = jax.random.normal(ks[2], (D, D), jnp.float32) * sc
    bk = jax.random.normal(ks[3], (1, D), jnp.float32) * sc
    Wv = jax.random.normal(ks[4], (D, D), jnp.float32) * sc
    bv = jax.random.normal(ks[5], (1, D), jnp.float32) * sc
    Wp = jax.random.normal(ks[6], (D, D), jnp.float32) * sc
    bp = jax.random.normal(ks[7], (1, D), jnp.float32) * sc
    g1 = 1.0 + jax.random.normal(ks[8], (1, D), jnp.float32) * 0.1
    be1 = jax.random.normal(ks[9], (1, D), jnp.float32) * 0.1
    W1 = jax.random.normal(ks[10], (D, D), jnp.float32) * sc
    b1 = jax.random.normal(ks[11], (1, D), jnp.float32) * sc
    W2 = jax.random.normal(ks[12], (D, D), jnp.float32) * sc
    b2 = jax.random.normal(ks[13], (1, D), jnp.float32) * sc
    g2 = 1.0 + jax.random.normal(ks[14], (1, D), jnp.float32) * 0.1
    be2 = jax.random.normal(ks[15], (1, D), jnp.float32) * 0.1

    params = (Wq, bq, Wk, bk, Wv, bv, Wp, bp, g1, be1, W1, b1, W2, b2, g2, be2)
    prepared = prepare_params(params, heads=H)     # bf16 cast + scale fold, done once

    x = jax.random.normal(jax.random.PRNGKey(42), (B, S, D), jnp.float32)

    out = encoder_pallas(x, prepared, heads=H)
    out = jax.block_until_ready(out)

    ref = encoder_reference(x, params, heads=H)
    assert out.shape == (B, S, D), out.shape
    # Tolerance covers bf16 MXU operands + tanh-GELU + approx reciprocal vs the
    # f32 / exact-erf reference.
    np.testing.assert_allclose(np.asarray(out), np.asarray(ref),
                               rtol=2e-2, atol=2e-2)
    print("KERNEL_OK")
</pallas_src>

<mosaic_0001>
module attributes {stable_mosaic.version = 11 : i64} {
  func.func @encoder_kernel(%arg0: i32, %arg1: memref<16x128xf32, #tpu.memory_space<vmem>>, %arg2: memref<128x128xbf16, #tpu.memory_space<vmem>>, %arg3: memref<1x128xf32, #tpu.memory_space<vmem>>, %arg4: memref<128x128xbf16, #tpu.memory_space<vmem>>, %arg5: memref<1x128xf32, #tpu.memory_space<vmem>>, %arg6: memref<128x128xbf16, #tpu.memory_space<vmem>>, %arg7: memref<1x128xf32, #tpu.memory_space<vmem>>, %arg8: memref<128x128xbf16, #tpu.memory_space<vmem>>, %arg9: memref<1x128xf32, #tpu.memory_space<vmem>>, %arg10: memref<1x128xf32, #tpu.memory_space<vmem>>, %arg11: memref<1x128xf32, #tpu.memory_space<vmem>>, %arg12: memref<128x128xbf16, #tpu.memory_space<vmem>>, %arg13: memref<1x128xf32, #tpu.memory_space<vmem>>, %arg14: memref<128x128xbf16, #tpu.memory_space<vmem>>, %arg15: memref<1x128xf32, #tpu.memory_space<vmem>>, %arg16: memref<1x128xf32, #tpu.memory_space<vmem>>, %arg17: memref<1x128xf32, #tpu.memory_space<vmem>>, %arg18: memref<16x128xf32, #tpu.memory_space<vmem>>, %arg19: memref<16x128xbf16, #tpu.memory_space<vmem>>) attributes {dimension_semantics = [#tpu.dimension_semantics<parallel>], iteration_bounds = array<i64: 2>, scalar_prefetch = 0 : i64, scratch_operands = 1 : i64, tpu.core_type = #tpu.core_type<tc>, window_params = [{transform_indices = @transform_0, window_bounds = array<i64: 16, 128>}, {pipeline_mode = #tpu.pipeline_mode<synchronous>, transform_indices = @transform_1, window_bounds = array<i64: 128, 128>}, {pipeline_mode = #tpu.pipeline_mode<synchronous>, transform_indices = @transform_2, window_bounds = array<i64: 1, 128>}, {pipeline_mode = #tpu.pipeline_mode<synchronous>, transform_indices = @transform_3, window_bounds = array<i64: 128, 128>}, {pipeline_mode = #tpu.pipeline_mode<synchronous>, transform_indices = @transform_4, window_bounds = array<i64: 1, 128>}, {pipeline_mode = #tpu.pipeline_mode<synchronous>, transform_indices = @transform_5, window_bounds = array<i64: 128, 128>}, {pipeline_mode = #tpu.pipeline_mode<synchronous>, transform_indices = @transform_6, window_bounds = array<i64: 1, 128>}, {pipeline_mode = #tpu.pipeline_mode<synchronous>, transform_indices = @transform_7, window_bounds = array<i64: 128, 128>}, {pipeline_mode = #tpu.pipeline_mode<synchronous>, transform_indices = @transform_8, window_bounds = array<i64: 1, 128>}, {pipeline_mode = #tpu.pipeline_mode<synchronous>, transform_indices = @transform_9, window_bounds = array<i64: 1, 128>}, {pipeline_mode = #tpu.pipeline_mode<synchronous>, transform_indices = @transform_10, window_bounds = array<i64: 1, 128>}, {pipeline_mode = #tpu.pipeline_mode<synchronous>, transform_indices = @transform_11, window_bounds = array<i64: 128, 128>}, {pipeline_mode = #tpu.pipeline_mode<synchronous>, transform_indices = @transform_12, window_bounds = array<i64: 1, 128>}, {pipeline_mode = #tpu.pipeline_mode<synchronous>, transform_indices = @transform_13, window_bounds = array<i64: 128, 128>}, {pipeline_mode = #tpu.pipeline_mode<synchronous>, transform_indices = @transform_14, window_bounds = array<i64: 1, 128>}, {pipeline_mode = #tpu.pipeline_mode<synchronous>, transform_indices = @transform_15, window_bounds = array<i64: 1, 128>}, {pipeline_mode = #tpu.pipeline_mode<synchronous>, transform_indices = @transform_16, window_bounds = array<i64: 1, 128>}, {transform_indices = @transform_17, window_bounds = array<i64: 16, 128>}]} {
    %c0 = arith.constant 0 : index
    %c0_0 = arith.constant 0 : index
    %0 = vector.load %arg1[%c0, %c0_0] : memref<16x128xf32, #tpu.memory_space<vmem>>, vector<16x128xf32>
    %1 = arith.truncf %0 : vector<16x128xf32> to vector<16x128xbf16>
    %c0_1 = arith.constant 0 : index
    %c0_2 = arith.constant 0 : index
    %2 = vector.load %arg2[%c0_1, %c0_2] : memref<128x128xbf16, #tpu.memory_space<vmem>>, vector<128x128xbf16>
    %cst = arith.constant dense<0.000000e+00> : vector<16x128xf32>
    %3 = tpu.matmul %1, %2, %cst {dimension_numbers = #tpu.dot_dimension_numbers<[1], [0], [0], [1], [0, 0, 1, 1], [], []>} : vector<16x128xbf16>, vector<128x128xbf16>, vector<16x128xf32> -> vector<16x128xf32>
    %c0_3 = arith.constant 0 : index
    %c0_4 = arith.constant 0 : index
    %4 = vector.load %arg3[%c0_3, %c0_4] : memref<1x128xf32, #tpu.memory_space<vmem>>, vector<1x128xf32>
    %5 = vector.broadcast %4 : vector<1x128xf32> to vector<16x128xf32>
    %6 = arith.addf %3, %5 : vector<16x128xf32>
    %7 = arith.truncf %6 : vector<16x128xf32> to vector<16x128xbf16>
    %c0_5 = arith.constant 0 : index
    %c0_6 = arith.constant 0 : index
    %8 = vector.load %arg4[%c0_5, %c0_6] : memref<128x128xbf16, #tpu.memory_space<vmem>>, vector<128x128xbf16>
    %cst_7 = arith.constant dense<0.000000e+00> : vector<16x128xf32>
    %9 = tpu.matmul %1, %8, %cst_7 {dimension_numbers = #tpu.dot_dimension_numbers<[1], [0], [0], [1], [0, 0, 1, 1], [], []>} : vector<16x128xbf16>, vector<128x128xbf16>, vector<16x128xf32> -> vector<16x128xf32>
    %c0_8 = arith.constant 0 : index
    %c0_9 = arith.constant 0 : index
    %10 = vector.load %arg5[%c0_8, %c0_9] : memref<1x128xf32, #tpu.memory_space<vmem>>, vector<1x128xf32>
    %11 = vector.broadcast %10 : vector<1x128xf32> to vector<16x128xf32>
    %12 = arith.addf %9, %11 : vector<16x128xf32>
    %13 = arith.truncf %12 : vector<16x128xf32> to vector<16x128xbf16>
    %c0_10 = arith.constant 0 : index
    %c0_11 = arith.constant 0 : index
    %14 = vector.load %arg6[%c0_10, %c0_11] : memref<128x128xbf16, #tpu.memory_space<vmem>>, vector<128x128xbf16>
    %cst_12 = arith.constant dense<0.000000e+00> : vector<16x128xf32>
    %15 = tpu.matmul %1, %14, %cst_12 {dimension_numbers = #tpu.dot_dimension_numbers<[1], [0], [0], [1], [0, 0, 1, 1], [], []>} : vector<16x128xbf16>, vector<128x128xbf16>, vector<16x128xf32> -> vector<16x128xf32>
    %c0_13 = arith.constant 0 : index
    %c0_14 = arith.constant 0 : index
    %16 = vector.load %arg7[%c0_13, %c0_14] : memref<1x128xf32, #tpu.memory_space<vmem>>, vector<1x128xf32>
    %17 = vector.broadcast %16 : vector<1x128xf32> to vector<16x128xf32>
    %18 = arith.addf %15, %17 : vector<16x128xf32>
    %19 = arith.truncf %18 : vector<16x128xf32> to vector<16x128xbf16>
    %20 = vector.extract_strided_slice %7 {offsets = [0, 0], sizes = [16, 16], strides = [1, 1]} : vector<16x128xbf16> to vector<16x16xbf16>
    %21 = vector.extract_strided_slice %7 {offsets = [0, 16], sizes = [16, 16], strides = [1, 1]} : vector<16x128xbf16> to vector<16x16xbf16>
    %22 = vector.extract_strided_slice %7 {offsets = [0, 32], sizes = [16, 16], strides = [1, 1]} : vector<16x128xbf16> to vector<16x16xbf16>
    %23 = vector.extract_strided_slice %7 {offsets = [0, 48], sizes = [16, 16], strides = [1, 1]} : vector<16x128xbf16> to vector<16x16xbf16>
    %24 = vector.extract_strided_slice %7 {offsets = [0, 64], sizes = [16, 16], strides = [1, 1]} : vector<16x128xbf16> to vector<16x16xbf16>
    %25 = vector.extract_strided_slice %7 {offsets = [0, 80], sizes = [16, 16], strides = [1, 1]} : vector<16x128xbf16> to vector<16x16xbf16>
    %26 = vector.extract_strided_slice %7 {offsets = [0, 96], sizes = [16, 16], strides = [1, 1]} : vector<16x128xbf16> to vector<16x16xbf16>
    %27 = vector.extract_strided_slice %7 {offsets = [0, 112], sizes = [16, 16], strides = [1, 1]} : vector<16x128xbf16> to vector<16x16xbf16>
    %28 = vector.shape_cast %20 : vector<16x16xbf16> to vector<1x16x16xbf16>
    %29 = vector.shape_cast %21 : vector<16x16xbf16> to vector<1x16x16xbf16>
    %30 = vector.shape_cast %22 : vector<16x16xbf16> to vector<1x16x16xbf16>
    %31 = vector.shape_cast %23 : vector<16x16xbf16> to vector<1x16x16xbf16>
    %32 = vector.shape_cast %24 : vector<16x16xbf16> to vector<1x16x16xbf16>
    %33 = vector.shape_cast %25 : vector<16x16xbf16> to vector<1x16x16xbf16>
    %34 = vector.shape_cast %26 : vector<16x16xbf16> to vector<1x16x16xbf16>
    %35 = vector.shape_cast %27 : vector<16x16xbf16> to vector<1x16x16xbf16>
    %36 = tpu.concatenate %28, %29, %30, %31, %32, %33, %34, %35 in 0 : vector<1x16x16xbf16>, vector<1x16x16xbf16>, vector<1x16x16xbf16>, vector<1x16x16xbf16>, vector<1x16x16xbf16>, vector<1x16x16xbf16>, vector<1x16x16xbf16>, vector<1x16x16xbf16> -> vector<8x16x16xbf16>
    %37 = vector.extract_strided_slice %13 {offsets = [0, 0], sizes = [16, 16], strides = [1, 1]} : vector<16x128xbf16> to vector<16x16xbf16>
    %38 = vector.extract_strided_slice %13 {offsets = [0, 16], sizes = [16, 16], strides = [1, 1]} : vector<16x128xbf16> to vector<16x16xbf16>
    %39 = vector.extract_strided_slice %13 {offsets = [0, 32], sizes = [16, 16], strides = [1, 1]} : vector<16x128xbf16> to vector<16x16xbf16>
    %40 = vector.extract_strided_slice %13 {offsets = [0, 48], sizes = [16, 16], strides = [1, 1]} : vector<16x128xbf16> to vector<16x16xbf16>
    %41 = vector.extract_strided_slice %13 {offsets = [0, 64], sizes = [16, 16], strides = [1, 1]} : vector<16x128xbf16> to vector<16x16xbf16>
    %42 = vector.extract_strided_slice %13 {offsets = [0, 80], sizes = [16, 16], strides = [1, 1]} : vector<16x128xbf16> to vector<16x16xbf16>
    %43 = vector.extract_strided_slice %13 {offsets = [0, 96], sizes = [16, 16], strides = [1, 1]} : vector<16x128xbf16> to vector<16x16xbf16>
    %44 = vector.extract_strided_slice %13 {offsets = [0, 112], sizes = [16, 16], strides = [1, 1]} : vector<16x128xbf16> to vector<16x16xbf16>
    %45 = vector.shape_cast %37 : vector<16x16xbf16> to vector<1x16x16xbf16>
    %46 = vector.shape_cast %38 : vector<16x16xbf16> to vector<1x16x16xbf16>
    %47 = vector.shape_cast %39 : vector<16x16xbf16> to vector<1x16x16xbf16>
    %48 = vector.shape_cast %40 : vector<16x16xbf16> to vector<1x16x16xbf16>
    %49 = vector.shape_cast %41 : vector<16x16xbf16> to vector<1x16x16xbf16>
    %50 = vector.shape_cast %42 : vector<16x16xbf16> to vector<1x16x16xbf16>
    %51 = vector.shape_cast %43 : vector<16x16xbf16> to vector<1x16x16xbf16>
    %52 = vector.shape_cast %44 : vector<16x16xbf16> to vector<1x16x16xbf16>
    %53 = tpu.concatenate %45, %46, %47, %48, %49, %50, %51, %52 in 0 : vector<1x16x16xbf16>, vector<1x16x16xbf16>, vector<1x16x16xbf16>, vector<1x16x16xbf16>, vector<1x16x16xbf16>, vector<1x16x16xbf16>, vector<1x16x16xbf16>, vector<1x16x16xbf16> -> vector<8x16x16xbf16>
    %54 = vector.extract_strided_slice %19 {offsets = [0, 0], sizes = [16, 16], strides = [1, 1]} : vector<16x128xbf16> to vector<16x16xbf16>
    %55 = vector.extract_strided_slice %19 {offsets = [0, 16], sizes = [16, 16], strides = [1, 1]} : vector<16x128xbf16> to vector<16x16xbf16>
    %56 = vector.extract_strided_slice %19 {offsets = [0, 32], sizes = [16, 16], strides = [1, 1]} : vector<16x128xbf16> to vector<16x16xbf16>
    %57 = vector.extract_strided_slice %19 {offsets = [0, 48], sizes = [16, 16], strides = [1, 1]} : vector<16x128xbf16> to vector<16x16xbf16>
    %58 = vector.extract_strided_slice %19 {offsets = [0, 64], sizes = [16, 16], strides = [1, 1]} : vector<16x128xbf16> to vector<16x16xbf16>
    %59 = vector.extract_strided_slice %19 {offsets = [0, 80], sizes = [16, 16], strides = [1, 1]} : vector<16x128xbf16> to vector<16x16xbf16>
    %60 = vector.extract_strided_slice %19 {offsets = [0, 96], sizes = [16, 16], strides = [1, 1]} : vector<16x128xbf16> to vector<16x16xbf16>
    %61 = vector.extract_strided_slice %19 {offsets = [0, 112], sizes = [16, 16], strides = [1, 1]} : vector<16x128xbf16> to vector<16x16xbf16>
    %62 = vector.shape_cast %54 : vector<16x16xbf16> to vector<1x16x16xbf16>
    %63 = vector.shape_cast %55 : vector<16x16xbf16> to vector<1x16x16xbf16>
    %64 = vector.shape_cast %56 : vector<16x16xbf16> to vector<1x16x16xbf16>
    %65 = vector.shape_cast %57 : vector<16x16xbf16> to vector<1x16x16xbf16>
    %66 = vector.shape_cast %58 : vector<16x16xbf16> to vector<1x16x16xbf16>
    %67 = vector.shape_cast %59 : vector<16x16xbf16> to vector<1x16x16xbf16>
    %68 = vector.shape_cast %60 : vector<16x16xbf16> to vector<1x16x16xbf16>
    %69 = vector.shape_cast %61 : vector<16x16xbf16> to vector<1x16x16xbf16>
    %70 = tpu.concatenate %62, %63, %64, %65, %66, %67, %68, %69 in 0 : vector<1x16x16xbf16>, vector<1x16x16xbf16>, vector<1x16x16xbf16>, vector<1x16x16xbf16>, vector<1x16x16xbf16>, vector<1x16x16xbf16>, vector<1x16x16xbf16>, vector<1x16x16xbf16> -> vector<8x16x16xbf16>
    "tpu.trace_start"() <{level = 10 : i32, message = "hqe,hke->hqk"}> : () -> ()
    %cst_15 = arith.constant dense<0.000000e+00> : vector<8x16x16xf32>
    %71 = tpu.matmul %36, %53, %cst_15 {dimension_numbers = #tpu.dot_dimension_numbers<[2], [2], [1], [1], [0, 0, 0, 1, 1, 1], [0], [0]>} : vector<8x16x16xbf16>, vector<8x16x16xbf16>, vector<8x16x16xf32> -> vector<8x16x16xf32>
    "tpu.trace_stop"() : () -> ()
    %cst_16 = arith.constant dense<0xFF800000> : vector<8x16xf32>
    %72 = vector.multi_reduction <maximumf>, %71, %cst_16 [1] : vector<8x16x16xf32> to vector<8x16xf32>
    %73 = vector.shape_cast %72 : vector<8x16xf32> to vector<8x1x16xf32>
    %74 = vector.broadcast %73 : vector<8x1x16xf32> to vector<8x16x16xf32>
    %75 = arith.subf %71, %74 : vector<8x16x16xf32>
    %76 = math.exp %75 : vector<8x16x16xf32>
    %cst_17 = arith.constant dense<0.000000e+00> : vector<8x16xf32>
    %77 = vector.multi_reduction <add>, %76, %cst_17 [1] : vector<8x16x16xf32> to vector<8x16xf32>
    %78 = vector.shape_cast %77 : vector<8x16xf32> to vector<8x1x16xf32>
    %79 = tpu.reciprocal %78 {approx = true} : vector<8x1x16xf32> -> vector<8x1x16xf32>
    %80 = vector.broadcast %79 : vector<8x1x16xf32> to vector<8x16x16xf32>
    %81 = arith.mulf %76, %80 : vector<8x16x16xf32>
    %82 = arith.truncf %81 : vector<8x16x16xf32> to vector<8x16x16xbf16>
    "tpu.trace_start"() <{level = 10 : i32, message = "hqk,hke->hqe"}> : () -> ()
    %cst_18 = arith.constant dense<0.000000e+00> : vector<8x16x16xf32>
    %83 = tpu.matmul %82, %70, %cst_18 {dimension_numbers = #tpu.dot_dimension_numbers<[2], [1], [1], [2], [0, 0, 0, 1, 1, 2], [0], [0]>} : vector<8x16x16xbf16>, vector<8x16x16xbf16>, vector<8x16x16xf32> -> vector<8x16x16xf32>
    "tpu.trace_stop"() : () -> ()
    %84 = vector.extract_strided_slice %83 {offsets = [0, 0, 0], sizes = [1, 16, 16], strides = [1, 1, 1]} : vector<8x16x16xf32> to vector<1x16x16xf32>
    %85 = vector.shape_cast %84 : vector<1x16x16xf32> to vector<16x16xf32>
    %86 = arith.truncf %85 : vector<16x16xf32> to vector<16x16xbf16>
    %c0_19 = arith.constant 0 : index
    %c0_20 = arith.constant 0 : index
    %87 = vector.load %arg19[%c0_19, %c0_20] : memref<16x128xbf16, #tpu.memory_space<vmem>>, vector<16x16xbf16>
    tpu.vector_store %arg19[%c0_19, %c0_20], %86 {strides = array<i32>} : memref<16x128xbf16, #tpu.memory_space<vmem>>, vector<16x16xbf16>,
    %88 = vector.extract_strided_slice %83 {offsets = [1, 0, 0], sizes = [1, 16, 16], strides = [1, 1, 1]} : vector<8x16x16xf32> to vector<1x16x16xf32>
    %89 = vector.shape_cast %88 : vector<1x16x16xf32> to vector<16x16xf32>
    %90 = arith.truncf %89 : vector<16x16xf32> to vector<16x16xbf16>
    %c0_21 = arith.constant 0 : index
    %c16 = arith.constant 16 : index
    %91 = vector.load %arg19[%c0_21, %c16] : memref<16x128xbf16, #tpu.memory_space<vmem>>, vector<16x16xbf16>
    tpu.vector_store %arg19[%c0_21, %c16], %90 {strides = array<i32>} : memref<16x128xbf16, #tpu.memory_space<vmem>>, vector<16x16xbf16>,
    %92 = vector.extract_strided_slice %83 {offsets = [2, 0, 0], sizes = [1, 16, 16], strides = [1, 1, 1]} : vector<8x16x16xf32> to vector<1x16x16xf32>
    %93 = vector.shape_cast %92 : vector<1x16x16xf32> to vector<16x16xf32>
    %94 = arith.truncf %93 : vector<16x16xf32> to vector<16x16xbf16>
    %c0_22 = arith.constant 0 : index
    %c32 = arith.constant 32 : index
    %95 = vector.load %arg19[%c0_22, %c32] : memref<16x128xbf16, #tpu.memory_space<vmem>>, vector<16x16xbf16>
    tpu.vector_store %arg19[%c0_22, %c32], %94 {strides = array<i32>} : memref<16x128xbf16, #tpu.memory_space<vmem>>, vector<16x16xbf16>,
    %96 = vector.extract_strided_slice %83 {offsets = [3, 0, 0], sizes = [1, 16, 16], strides = [1, 1, 1]} : vector<8x16x16xf32> to vector<1x16x16xf32>
    %97 = vector.shape_cast %96 : vector<1x16x16xf32> to vector<16x16xf32>
    %98 = arith.truncf %97 : vector<16x16xf32> to vector<16x16xbf16>
    %c0_23 = arith.constant 0 : index
    %c48 = arith.constant 48 : index
    %99 = vector.load %arg19[%c0_23, %c48] : memref<16x128xbf16, #tpu.memory_space<vmem>>, vector<16x16xbf16>
    tpu.vector_store %arg19[%c0_23, %c48], %98 {strides = array<i32>} : memref<16x128xbf16, #tpu.memory_space<vmem>>, vector<16x16xbf16>,
    %100 = vector.extract_strided_slice %83 {offsets = [4, 0, 0], sizes = [1, 16, 16], strides = [1, 1, 1]} : vector<8x16x16xf32> to vector<1x16x16xf32>
    %101 = vector.shape_cast %100 : vector<1x16x16xf32> to vector<16x16xf32>
    %102 = arith.truncf %101 : vector<16x16xf32> to vector<16x16xbf16>
    %c0_24 = arith.constant 0 : index
    %c64 = arith.constant 64 : index
    %103 = vector.load %arg19[%c0_24, %c64] : memref<16x128xbf16, #tpu.memory_space<vmem>>, vector<16x16xbf16>
    tpu.vector_store %arg19[%c0_24, %c64], %102 {strides = array<i32>} : memref<16x128xbf16, #tpu.memory_space<vmem>>, vector<16x16xbf16>,
    %104 = vector.extract_strided_slice %83 {offsets = [5, 0, 0], sizes = [1, 16, 16], strides = [1, 1, 1]} : vector<8x16x16xf32> to vector<1x16x16xf32>
    %105 = vector.shape_cast %104 : vector<1x16x16xf32> to vector<16x16xf32>
    %106 = arith.truncf %105 : vector<16x16xf32> to vector<16x16xbf16>
    %c0_25 = arith.constant 0 : index
    %c80 = arith.constant 80 : index
    %107 = vector.load %arg19[%c0_25, %c80] : memref<16x128xbf16, #tpu.memory_space<vmem>>, vector<16x16xbf16>
    tpu.vector_store %arg19[%c0_25, %c80], %106 {strides = array<i32>} : memref<16x128xbf16, #tpu.memory_space<vmem>>, vector<16x16xbf16>,
    %108 = vector.extract_strided_slice %83 {offsets = [6, 0, 0], sizes = [1, 16, 16], strides = [1, 1, 1]} : vector<8x16x16xf32> to vector<1x16x16xf32>
    %109 = vector.shape_cast %108 : vector<1x16x16xf32> to vector<16x16xf32>
    %110 = arith.truncf %109 : vector<16x16xf32> to vector<16x16xbf16>
    %c0_26 = arith.constant 0 : index
    %c96 = arith.constant 96 : index
    %111 = vector.load %arg19[%c0_26, %c96] : memref<16x128xbf16, #tpu.memory_space<vmem>>, vector<16x16xbf16>
    tpu.vector_store %arg19[%c0_26, %c96], %110 {strides = array<i32>} : memref<16x128xbf16, #tpu.memory_space<vmem>>, vector<16x16xbf16>,
    %112 = vector.extract_strided_slice %83 {offsets = [7, 0, 0], sizes = [1, 16, 16], strides = [1, 1, 1]} : vector<8x16x16xf32> to vector<1x16x16xf32>
    %113 = vector.shape_cast %112 : vector<1x16x16xf32> to vector<16x16xf32>
    %114 = arith.truncf %113 : vector<16x16xf32> to vector<16x16xbf16>
    %c0_27 = arith.constant 0 : index
    %c112 = arith.constant 112 : index
    %115 = vector.load %arg19[%c0_27, %c112] : memref<16x128xbf16, #tpu.memory_space<vmem>>, vector<16x16xbf16>
    tpu.vector_store %arg19[%c0_27, %c112], %114 {strides = array<i32>} : memref<16x128xbf16, #tpu.memory_space<vmem>>, vector<16x16xbf16>,
    %c0_28 = arith.constant 0 : index
    %c0_29 = arith.constant 0 : index
    %116 = vector.load %arg19[%c0_28, %c0_29] : memref<16x128xbf16, #tpu.memory_space<vmem>>, vector<16x128xbf16>
    %c0_30 = arith.constant 0 : index
    %c0_31 = arith.constant 0 : index
    %117 = vector.load %arg8[%c0_30, %c0_31] : memref<128x128xbf16, #tpu.memory_space<vmem>>, vector<128x128xbf16>
    %cst_32 = arith.constant dense<0.000000e+00> : vector<16x128xf32>
    %118 = tpu.matmul %116, %117, %cst_32 {dimension_numbers = #tpu.dot_dimension_numbers<[1], [0], [0], [1], [0, 0, 1, 1], [], []>} : vector<16x128xbf16>, vector<128x128xbf16>, vector<16x128xf32> -> vector<16x128xf32>
    %c0_33 = arith.constant 0 : index
    %c0_34 = arith.constant 0 : index
    %119 = vector.load %arg9[%c0_33, %c0_34] : memref<1x128xf32, #tpu.memory_space<vmem>>, vector<1x128xf32>
    %120 = vector.broadcast %119 : vector<1x128xf32> to vector<16x128xf32>
    %121 = arith.addf %118, %120 : vector<16x128xf32>
    %122 = arith.addf %0, %121 : vector<16x128xf32>
    %c0_35 = arith.constant 0 : index
    %c0_36 = arith.constant 0 : index
    %123 = vector.load %arg10[%c0_35, %c0_36] : memref<1x128xf32, #tpu.memory_space<vmem>>, vector<1x128xf32>
    %c0_37 = arith.constant 0 : index
    %c0_38 = arith.constant 0 : index
    %124 = vector.load %arg11[%c0_37, %c0_38] : memref<1x128xf32, #tpu.memory_space<vmem>>, vector<1x128xf32>
    %cst_39 = arith.constant dense<0.000000e+00> : vector<16xf32>
    %125 = vector.multi_reduction <add>, %122, %cst_39 [1] : vector<16x128xf32> to vector<16xf32>
    %126 = vector.shape_cast %125 : vector<16xf32> to vector<16x1xf32>
    %cst_40 = arith.constant 1.280000e+02 : f32
    %127 = vector.broadcast %cst_40 : f32 to vector<16x1xf32>
    %128 = arith.divf %126, %127 : vector<16x1xf32>
    %129 = vector.broadcast %128 : vector<16x1xf32> to vector<16x128xf32>
    %130 = arith.subf %122, %129 : vector<16x128xf32>
    %131 = arith.mulf %130, %130 : vector<16x128xf32>
    %cst_41 = arith.constant dense<0.000000e+00> : vector<16xf32>
    %132 = vector.multi_reduction <add>, %131, %cst_41 [1] : vector<16x128xf32> to vector<16xf32>
    %133 = vector.shape_cast %132 : vector<16xf32> to vector<16x1xf32>
    %cst_42 = arith.constant 1.280000e+02 : f32
    %134 = vector.broadcast %cst_42 : f32 to vector<16x1xf32>
    %135 = arith.divf %133, %134 : vector<16x1xf32>
    %136 = vector.broadcast %128 : vector<16x1xf32> to vector<16x128xf32>
    %137 = arith.subf %122, %136 : vector<16x128xf32>
    %cst_43 = arith.constant 9.99999974E-6 : f32
    %138 = vector.broadcast %cst_43 : f32 to vector<16x1xf32>
    %139 = arith.addf %135, %138 : vector<16x1xf32>
    %140 = math.rsqrt %139 : vector<16x1xf32>
    %141 = vector.broadcast %140 : vector<16x1xf32> to vector<16x128xf32>
    %142 = arith.mulf %137, %141 : vector<16x128xf32>
    %143 = vector.broadcast %123 : vector<1x128xf32> to vector<16x128xf32>
    %144 = arith.mulf %142, %143 : vector<16x128xf32>
    %145 = vector.broadcast %124 : vector<1x128xf32> to vector<16x128xf32>
    %146 = arith.addf %144, %145 : vector<16x128xf32>
    %147 = arith.truncf %146 : vector<16x128xf32> to vector<16x128xbf16>
    %c0_44 = arith.constant 0 : index
    %c0_45 = arith.constant 0 : index
    %148 = vector.load %arg12[%c0_44, %c0_45] : memref<128x128xbf16, #tpu.memory_space<vmem>>, vector<128x128xbf16>
    %cst_46 = arith.constant dense<0.000000e+00> : vector<16x128xf32>
    %149 = tpu.matmul %147, %148, %cst_46 {dimension_numbers = #tpu.dot_dimension_numbers<[1], [0], [0], [1], [0, 0, 1, 1], [], []>} : vector<16x128xbf16>, vector<128x128xbf16>, vector<16x128xf32> -> vector<16x128xf32>
    %c0_47 = arith.constant 0 : index
    %c0_48 = arith.constant 0 : index
    %150 = vector.load %arg13[%c0_47, %c0_48] : memref<1x128xf32, #tpu.memory_space<vmem>>, vector<1x128xf32>
    %151 = vector.broadcast %150 : vector<1x128xf32> to vector<16x128xf32>
    %152 = arith.addf %149, %151 : vector<16x128xf32>
    %cst_49 = arith.constant 5.000000e-01 : f32
    %153 = vector.broadcast %cst_49 : f32 to vector<16x128xf32>
    %154 = arith.mulf %153, %152 : vector<16x128xf32>
    %cst_50 = arith.constant 4.471500e-02 : f32
    %155 = vector.broadcast %cst_50 : f32 to vector<16x128xf32>
    %156 = arith.mulf %155, %152 : vector<16x128xf32>
    %157 = arith.mulf %156, %152 : vector<16x128xf32>
    %158 = arith.mulf %157, %152 : vector<16x128xf32>
    %159 = arith.addf %152, %158 : vector<16x128xf32>
    %cst_51 = arith.constant 0.797884583 : f32
    %160 = vector.broadcast %cst_51 : f32 to vector<16x128xf32>
    %161 = arith.mulf %160, %159 : vector<16x128xf32>
    %162 = math.tanh %161 : vector<16x128xf32>
    %cst_52 = arith.constant 1.000000e+00 : f32
    %163 = vector.broadcast %cst_52 : f32 to vector<16x128xf32>
    %164 = arith.addf %163, %162 : vector<16x128xf32>
    %165 = arith.mulf %154, %164 : vector<16x128xf32>
    %166 = arith.truncf %165 : vector<16x128xf32> to vector<16x128xbf16>
    %c0_53 = arith.constant 0 : index
    %c0_54 = arith.constant 0 : index
    %167 = vector.load %arg14[%c0_53, %c0_54] : memref<128x128xbf16, #tpu.memory_space<vmem>>, vector<128x128xbf16>
    %cst_55 = arith.constant dense<0.000000e+00> : vector<16x128xf32>
    %168 = tpu.matmul %166, %167, %cst_55 {dimension_numbers = #tpu.dot_dimension_numbers<[1], [0], [0], [1], [0, 0, 1, 1], [], []>} : vector<16x128xbf16>, vector<128x128xbf16>, vector<16x128xf32> -> vector<16x128xf32>
    %c0_56 = arith.constant 0 : index
    %c0_57 = arith.constant 0 : index
    %169 = vector.load %arg15[%c0_56, %c0_57] : memref<1x128xf32, #tpu.memory_space<vmem>>, vector<1x128xf32>
    %170 = vector.broadcast %169 : vector<1x128xf32> to vector<16x128xf32>
    %171 = arith.addf %168, %170 : vector<16x128xf32>
    %cst_58 = arith.constant 5.000000e-01 : f32
    %172 = vector.broadcast %cst_58 : f32 to vector<16x128xf32>
    %173 = arith.mulf %172, %171 : vector<16x128xf32>
    %cst_59 = arith.constant 4.471500e-02 : f32
    %174 = vector.broadcast %cst_59 : f32 to vector<16x128xf32>
    %175 = arith.mulf %174, %171 : vector<16x128xf32>
    %176 = arith.mulf %175, %171 : vector<16x128xf32>
    %177 = arith.mulf %176, %171 : vector<16x128xf32>
    %178 = arith.addf %171, %177 : vector<16x128xf32>
    %cst_60 = arith.constant 0.797884583 : f32
    %179 = vector.broadcast %cst_60 : f32 to vector<16x128xf32>
    %180 = arith.mulf %179, %178 : vector<16x128xf32>
    %181 = math.tanh %180 : vector<16x128xf32>
    %cst_61 = arith.constant 1.000000e+00 : f32
    %182 = vector.broadcast %cst_61 : f32 to vector<16x128xf32>
    %183 = arith.addf %182, %181 : vector<16x128xf32>
    %184 = arith.mulf %173, %183 : vector<16x128xf32>
    %185 = arith.addf %146, %184 : vector<16x128xf32>
    %c0_62 = arith.constant 0 : index
    %c0_63 = arith.constant 0 : index
    %186 = vector.load %arg16[%c0_62, %c0_63] : memref<1x128xf32, #tpu.memory_space<vmem>>, vector<1x128xf32>
    %c0_64 = arith.constant 0 : index
    %c0_65 = arith.constant 0 : index
    %187 = vector.load %arg17[%c0_64, %c0_65] : memref<1x128xf32, #tpu.memory_space<vmem>>, vector<1x128xf32>
    %cst_66 = arith.constant dense<0.000000e+00> : vector<16xf32>
    %188 = vector.multi_reduction <add>, %185, %cst_66 [1] : vector<16x128xf32> to vector<16xf32>
    %189 = vector.shape_cast %188 : vector<16xf32> to vector<16x1xf32>
    %cst_67 = arith.constant 1.280000e+02 : f32
    %190 = vector.broadcast %cst_67 : f32 to vector<16x1xf32>
    %191 = arith.divf %189, %190 : vector<16x1xf32>
    %192 = vector.broadcast %191 : vector<16x1xf32> to vector<16x128xf32>
    %193 = arith.subf %185, %192 : vector<16x128xf32>
    %194 = arith.mulf %193, %193 : vector<16x128xf32>
    %cst_68 = arith.constant dense<0.000000e+00> : vector<16xf32>
    %195 = vector.multi_reduction <add>, %194, %cst_68 [1] : vector<16x128xf32> to vector<16xf32>
    %196 = vector.shape_cast %195 : vector<16xf32> to vector<16x1xf32>
    %cst_69 = arith.constant 1.280000e+02 : f32
    %197 = vector.broadcast %cst_69 : f32 to vector<16x1xf32>
    %198 = arith.divf %196, %197 : vector<16x1xf32>
    %199 = vector.broadcast %191 : vector<16x1xf32> to vector<16x128xf32>
    %200 = arith.subf %185, %199 : vector<16x128xf32>
    %cst_70 = arith.constant 9.99999974E-6 : f32
    %201 = vector.broadcast %cst_70 : f32 to vector<16x1xf32>
    %202 = arith.addf %198, %201 : vector<16x1xf32>
    %203 = math.rsqrt %202 : vector<16x1xf32>
    %204 = vector.broadcast %203 : vector<16x1xf32> to vector<16x128xf32>
    %205 = arith.mulf %200, %204 : vector<16x128xf32>
    %206 = vector.broadcast %186 : vector<1x128xf32> to vector<16x128xf32>
    %207 = arith.mulf %205, %206 : vector<16x128xf32>
    %208 = vector.broadcast %187 : vector<1x128xf32> to vector<16x128xf32>
    %209 = arith.addf %207, %208 : vector<16x128xf32>
    %c0_71 = arith.constant 0 : index
    %c0_72 = arith.constant 0 : index
    %210 = vector.load %arg18[%c0_71, %c0_72] : memref<16x128xf32, #tpu.memory_space<vmem>>, vector<16x128xf32>
    tpu.vector_store %arg18[%c0_71, %c0_72], %209 {strides = array<i32>} : memref<16x128xf32, #tpu.memory_space<vmem>>, vector<16x128xf32>,
    return
  }
  func.func @transform_0(%arg0: i32) -> (i32, i32) {
    %c0_i32 = arith.constant 0 : i32
    %c0_i32_0 = arith.constant 0 : i32
    return %arg0, %c0_i32 : i32, i32
  }
  func.func @transform_1(%arg0: i32) -> (i32, i32) {
    %c0_i32 = arith.constant 0 : i32
    %c0_i32_0 = arith.constant 0 : i32
    %c0_i32_1 = arith.constant 0 : i32
    return %c0_i32, %c0_i32_0 : i32, i32
  }
  func.func @transform_2(%arg0: i32) -> (i32, i32) {
    %c0_i32 = arith.constant 0 : i32
    %c0_i32_0 = arith.constant 0 : i32
    %c0_i32_1 = arith.constant 0 : i32
    return %c0_i32, %c0_i32_0 : i32, i32
  }
  func.func @transform_3(%arg0: i32) -> (i32, i32) {
    %c0_i32 = arith.constant 0 : i32
    %c0_i32_0 = arith.constant 0 : i32
    %c0_i32_1 = arith.constant 0 : i32
    return %c0_i32, %c0_i32_0 : i32, i32
  }
  func.func @transform_4(%arg0: i32) -> (i32, i32) {
    %c0_i32 = arith.constant 0 : i32
    %c0_i32_0 = arith.constant 0 : i32
    %c0_i32_1 = arith.constant 0 : i32
    return %c0_i32, %c0_i32_0 : i32, i32
  }
  func.func @transform_5(%arg0: i32) -> (i32, i32) {
    %c0_i32 = arith.constant 0 : i32
    %c0_i32_0 = arith.constant 0 : i32
    %c0_i32_1 = arith.constant 0 : i32
    return %c0_i32, %c0_i32_0 : i32, i32
  }
  func.func @transform_6(%arg0: i32) -> (i32, i32) {
    %c0_i32 = arith.constant 0 : i32
    %c0_i32_0 = arith.constant 0 : i32
    %c0_i32_1 = arith.constant 0 : i32
    return %c0_i32, %c0_i32_0 : i32, i32
  }
  func.func @transform_7(%arg0: i32) -> (i32, i32) {
    %c0_i32 = arith.constant 0 : i32
    %c0_i32_0 = arith.constant 0 : i32
    %c0_i32_1 = arith.constant 0 : i32
    return %c0_i32, %c0_i32_0 : i32, i32
  }
  func.func @transform_8(%arg0: i32) -> (i32, i32) {
    %c0_i32 = arith.constant 0 : i32
    %c0_i32_0 = arith.constant 0 : i32
    %c0_i32_1 = arith.constant 0 : i32
    return %c0_i32, %c0_i32_0 : i32, i32
  }
  func.func @transform_9(%arg0: i32) -> (i32, i32) {
    %c0_i32 = arith.constant 0 : i32
    %c0_i32_0 = arith.constant 0 : i32
    %c0_i32_1 = arith.constant 0 : i32
    return %c0_i32, %c0_i32_0 : i32, i32
  }
  func.func @transform_10(%arg0: i32) -> (i32, i32) {
    %c0_i32 = arith.constant 0 : i32
    %c0_i32_0 = arith.constant 0 : i32
    %c0_i32_1 = arith.constant 0 : i32
    return %c0_i32, %c0_i32_0 : i32, i32
  }
  func.func @transform_11(%arg0: i32) -> (i32, i32) {
    %c0_i32 = arith.constant 0 : i32
    %c0_i32_0 = arith.constant 0 : i32
    %c0_i32_1 = arith.constant 0 : i32
    return %c0_i32, %c0_i32_0 : i32, i32
  }
  func.func @transform_12(%arg0: i32) -> (i32, i32) {
    %c0_i32 = arith.constant 0 : i32
    %c0_i32_0 = arith.constant 0 : i32
    %c0_i32_1 = arith.constant 0 : i32
    return %c0_i32, %c0_i32_0 : i32, i32
  }
  func.func @transform_13(%arg0: i32) -> (i32, i32) {
    %c0_i32 = arith.constant 0 : i32
    %c0_i32_0 = arith.constant 0 : i32
    %c0_i32_1 = arith.constant 0 : i32
    return %c0_i32, %c0_i32_0 : i32, i32
  }
  func.func @transform_14(%arg0: i32) -> (i32, i32) {
    %c0_i32 = arith.constant 0 : i32
    %c0_i32_0 = arith.constant 0 : i32
    %c0_i32_1 = arith.constant 0 : i32
    return %c0_i32, %c0_i32_0 : i32, i32
  }
  func.func @transform_15(%arg0: i32) -> (i32, i32) {
    %c0_i32 = arith.constant 0 : i32
    %c0_i32_0 = arith.constant 0 : i32
    %c0_i32_1 = arith.constant 0 : i32
    return %c0_i32, %c0_i32_0 : i32, i32
  }
  func.func @transform_16(%arg0: i32) -> (i32, i32) {
    %c0_i32 = arith.constant 0 : i32
    %c0_i32_0 = arith.constant 0 : i32
    %c0_i32_1 = arith.constant 0 : i32
    return %c0_i32, %c0_i32_0 : i32, i32
  }
  func.func @transform_17(%arg0: i32) -> (i32, i32) {
    %c0_i32 = arith.constant 0 : i32
    %c0_i32_0 = arith.constant 0 : i32
    return %arg0, %c0_i32 : i32, i32
  }
}

</mosaic_0001>

<bundles_post_ra>
// kernel: tpu_custom_call.1
= control target key start
LH: loop header
LB: loop body
LE: loop exit
PB: predicated region body
PF: predicated region fallthrough
CT: control target
= control target key end

     0   :  { %s4355_s0 = inlined_call_operand.hbm [shape: f32[32,128], index: 0, kind: input, shape index: {}]   ;;  %s4356_s1 = inlined_call_operand.hbm [shape: bf16[128,128], index: 1, kind: input, shape index: {}]   ;;  %s4357_s2 = inlined_call_operand.vmem [shape: f32[1,128], index: 2, kind: input, shape index: {}]   ;;  %s4358_s3 = inlined_call_operand.hbm [shape: bf16[128,128], index: 3, kind: input, shape index: {}]   ;;  %s4359_s4 = inlined_call_operand.vmem [shape: f32[1,128], index: 4, kind: input, shape index: {}]   ;;  %s4360_s5 = inlined_call_operand.hbm [shape: bf16[128,128], index: 5, kind: input, shape index: {}]   ;;  %s4361_s6 = inlined_call_operand.vmem [shape: f32[1,128], index: 6, kind: input, shape index: {}]   ;;  %s4362_s7 = inlined_call_operand.hbm [shape: bf16[128,128], index: 7, kind: input, shape index: {}]   ;;  %s4363_s8 = inlined_call_operand.vmem [shape: f32[1,128], index: 8, kind: input, shape index: {}]   ;;  %s4364_s9 = inlined_call_operand.vmem [shape: f32[1,128], index: 9, kind: input, shape index: {}]   ;;  %s4365_s10 = inlined_call_operand.vmem [shape: f32[1,128], index: 10, kind: input, shape index: {}]   ;;  %s4366_s11 = inlined_call_operand.hbm [shape: bf16[128,128], index: 11, kind: input, shape index: {}]   ;;  %s4367_s12 = inlined_call_operand.vmem [shape: f32[1,128], index: 12, kind: input, shape index: {}]   ;;  %s4368_s13 = inlined_call_operand.hbm [shape: bf16[128,128], index: 13, kind: input, shape index: {}]   ;;  %s4369_s14 = inlined_call_operand.vmem [shape: f32[1,128], index: 14, kind: input, shape index: {}]   ;;  %s4370_s15 = inlined_call_operand.vmem [shape: f32[1,128], index: 15, kind: input, shape index: {}]   ;;  %s4371_s16 = inlined_call_operand.vmem [shape: f32[1,128], index: 16, kind: input, shape index: {}]   ;;  %s4372_s17 = inlined_call_operand.hbm [shape: f32[32,128], index: 17, kind: output, shape index: {}]  }
   0x1   :  { %4380 = sst [smem:[#allocation23_spill]] %s4355_s0 }
   0x2   :  { %4381 = sst [smem:[#allocation24_spill]] %s4356_s1 }
   0x3   :  { %4382 = sst [smem:[#allocation25_spill]] %s4358_s3 }
   0x4   :  { %4383 = sst [smem:[#allocation26_spill]] %s4360_s5 }
   0x5   :  { %4384 = sst [smem:[#allocation27_spill]] %s4362_s7 }
   0x6   :  { %4385 = sst [smem:[#allocation28_spill]] %s4366_s11 }
   0x7   :  { %4386 = sst [smem:[#allocation29_spill]] %s4368_s13 }
   0x8   :  { %4387 = sst [smem:[#allocation30_spill]] %s4370_s15 }
   0x9   :  { %4388 = sst [smem:[#allocation31_spill]] %s4371_s16 }
   0xa   :  { %4389 = sst [smem:[#allocation32_spill]] %s4372_s17 }
   0xb   :  { %22 = vsyncpa [#allocation4], 0 }
   0xc   :  { %24 = vsyncpa [#allocation4 + $0x1], 0 }
   0xd   :  { %25 = vsyncpa [#allocation7], 0 }
   0xe   :  { %26 = vsyncpa [#allocation10], 0 }
   0xf   :  { %27 = vsyncpa [#allocation13], 0 }
  0x10   :  { %28 = vsyncpa [#allocation5], 0 }
  0x11   :  { %30 = vsyncpa [#allocation5 + $0x1], 0  ;;  %s3782_s24 = smov 0   ;;  %s3784_s25 = smov 0  }
  0x12   :  { %s3786_s26 = smov 0   ;;  %s3788_s27 = smov 0  }
  0x13 LB: > { %4390 = sst [smem:[#allocation21_spill]] %s3663_s26  ;;  %s3669_s28 = smov [#allocation6]   ;;  %s3667_s27 = sphi %s3788_s27, %s4425_s27   ;;  %s3663_s26 = sphi %s3786_s26, %s4422_s26   ;;  %s3659_s25 = sphi %s3784_s25, %s4424_s25   ;;  %s3655_s24 = sphi %s3782_s24, %s4423_s24  }
  0x14   : > { %s441_s29 = sshll.u32 %s3669_s28, 4  ;;  %s3803_s0 = sadd.s32 4294967295, %s3667_s27   ;;  %s442_s29 = int_to_ptr.vmem [resolvable:$true] %s441_s29 }
  0x15   : > { %p2734_p0 = scmp.ge.s32.totalorder %s3667_s27, 1  ;;  %p4375_p1 = scmp.eq.s32.totalorder %s3803_s0, 0 }
  0x16   : > { %p429_p2 = scmp.lt.s32.totalorder %s3667_s27, 3  ;;  %s3670_s18 = smov [#allocation9]  }
  0x17   : > { %s473_s19 = sshll.u32 %s3670_s18, 4  ;;  %s3671_s20 = smov [#allocation12]   ;;  %s3821_s19 = int_to_ptr.vmem [resolvable:$true] %s473_s19 }
  0x18   : > { %p3808_p3 = pnand %p2734_p0, %p429_p2  ;;  %s511_s21 = sshll.u32 %s3671_s20, 4  ;;  %s3823_s21 = int_to_ptr.vmem [resolvable:$true] %s511_s21 }
  0x19   : > { %s3418_s23 = scalar_lea.vmem %s442_s29, 1024  ;;  %p3426_p11 = scmp.lt.s32.totalorder %s442_s29, %s442_s29 }
  0x1a   : > { %s4391_s30 = scalar_select %p3808_p3, 1, 0 }
  0x1b   : > { %p3198_p5 = pneg %p3808_p3  ;;  %p3419_p8 = scmp.ne.s32.totalorder %s442_s29, %s3418_s23 }
  0x1c   : > { %p3427_p12 = scmp.lt.s32.totalorder %s3418_s23, %s3418_s23 }
  0x1d   : > { %p3817_p6 = pnand %p3198_p5, %p4375_p1 }
  0x1e   : > { %p3428_p13 = por %p3427_p12, %p3426_p11 }
  0x1f   : > { %p3827_p7 = pneg %p3817_p6 }
  0x21   : > { %p3421_p9 = pnand %p3419_p8, %p3827_p7 }
  0x23   : > { %p3422_p10 = pneg %p3421_p9 }
  0x25   : > { %p3429_p0 = pnand %p3428_p13, %p3422_p10 }
  0x27   : > { %3432 = shalt.err (!%p3429_p0)
}
  0x28   : > { %s3672_s28 = smov 64   ;;  %s3673_s18 = smov 4  }
  0x29   : > { %s4394_s16 = sld [smem:[#allocation24_spill]]  ;;  %s3444_s15 = scalar_lea.vmem %s3821_s19, 1024 }
  0x2a   : > { %p3445_p2 = scmp.ne.s32.totalorder %s3821_s19, %s3444_s15  ;;  %p3452_p9 = scmp.lt.s32.totalorder %s3821_s19, %s3821_s19 }
  0x2b   : > { %p3453_p10 = scmp.lt.s32.totalorder %s3444_s15, %s3444_s15 }
  0x2c   : > { %p3447_p5 = pnand %p3445_p2, %p3827_p7 }
  0x2d   : > { %p3454_p11 = por %p3453_p10, %p3452_p9 }
  0x2e   : > { %p3448_p8 = pneg %p3447_p5 }
  0x2f   : > { %3201 = dma.hbm_to_vmem [thread:$0]  (!%p3817_p6), %s4394_s16, 1024, %s442_s29, [#allocation7], %s3672_s28, %s3672_s28, %s3673_s18  }
  0x30   : > { %p3455_p12 = pnand %p3454_p11, %p3448_p8 }
  0x32   : > { %3458 = shalt.err (!%p3455_p12)
}
  0x33   : > { %s4395_s5 = sld [smem:[#allocation26_spill]]  ;;  %s3470_s16 = scalar_lea.vmem %s3823_s21, 1024 }
  0x34   : > { %p3471_p13 = scmp.ne.s32.totalorder %s3823_s21, %s3470_s16  ;;  %p3478_p5 = scmp.lt.s32.totalorder %s3823_s21, %s3823_s21 }
  0x35   : > { %p3479_p8 = scmp.lt.s32.totalorder %s3470_s16, %s3470_s16 }
  0x36   : > { %p3473_p0 = pnand %p3471_p13, %p3827_p7 }
  0x37   : > { %p3480_p9 = por %p3479_p8, %p3478_p5 }
  0x38   : > { %p3474_p2 = pneg %p3473_p0 }
  0x39   : > { %3207 = dma.hbm_to_vmem [thread:$0]  (!%p3817_p6), %s4395_s5, 1024, %s3821_s19, [#allocation10], %s3672_s28, %s3672_s28, %s3673_s18  }
  0x3a   : > { %p3481_p10 = pnand %p3480_p9, %p3474_p2 }
  0x3c   : > { %3484 = shalt.err (!%p3481_p10)
}
  0x3d   : > { %s4396_s11 = sld [smem:[#allocation28_spill]]  ;;  %s3674_s19 = smov [#allocation8]  }
  0x3e   : > { %s457_s20 = sshll.u32 %s3674_s19, 4  ;;  %s3675_s23 = smov [#allocation11]   ;;  %s458_s20 = int_to_ptr.vmem [resolvable:$true] %s457_s20 }
  0x3f   : > { %s489_s17 = sshll.u32 %s3675_s23, 4  ;;  %s3496_s16 = scalar_lea.vmem %s458_s20, 1024  ;;  %s490_s17 = int_to_ptr.vmem [resolvable:$true] %s489_s17 }
  0x40   : > { %p3497_p11 = scmp.ne.s32.totalorder %s458_s20, %s3496_s16  ;;  %p3504_p0 = scmp.lt.s32.totalorder %s458_s20, %s458_s20 }
  0x41   : > { %p3505_p2 = scmp.lt.s32.totalorder %s3496_s16, %s3496_s16 }
  0x42   : > { %p3499_p12 = pnand %p3497_p11, %p3827_p7 }
  0x43   : > { %3213 = dma.hbm_to_vmem [thread:$0]  (!%p3817_p6), %s4396_s11, 1024, %s3823_s21, [#allocation13], %s3672_s28, %s3672_s28, %s3673_s18  }
  0x44   : > { %p3500_p13 = pneg %p3499_p12  ;;  %p3506_p5 = por %p3505_p2, %p3504_p0 }
  0x46   : > { %p3507_p8 = pnand %p3506_p5, %p3500_p13 }
  0x48   : > { %3510 = shalt.err (!%p3507_p8)
}
  0x49   : > { %s4397_s3 = sld [smem:[#allocation25_spill]]  ;;  %s3522_s29 = scalar_lea.vmem %s490_s17, 1024 }
  0x4a   : > { %p3523_p9 = scmp.ne.s32.totalorder %s490_s17, %s3522_s29  ;;  %p3530_p12 = scmp.lt.s32.totalorder %s490_s17, %s490_s17 }
  0x4b   : > { %p3531_p0 = scmp.lt.s32.totalorder %s3522_s29, %s3522_s29 }
  0x4c   : > { %p3525_p10 = pnand %p3523_p9, %p3827_p7 }
  0x4d   : > { %p3532_p13 = por %p3531_p0, %p3530_p12 }
  0x4e   : > { %p3526_p11 = pneg %p3525_p10 }
  0x4f   : > { %3204 = dma.hbm_to_vmem [thread:$0]  (!%p3817_p6), %s4397_s3, 1024, %s458_s20, [#allocation7], %s3672_s28, %s3672_s28, %s3673_s18  }
  0x50   : > { %p3533_p2 = pnand %p3532_p13, %p3526_p11 }
  0x52   : > { %3536 = shalt.err (!%p3533_p2)
}
  0x53   : > { %s4398_s7 = sld [smem:[#allocation27_spill]]  ;;  %s3676_s20 = smov [#allocation14]  }
  0x54   : > { %s527_s16 = sshll.u32 %s3676_s20, 4  ;;  %s528_s16 = int_to_ptr.vmem [resolvable:$true] %s527_s16 }
  0x55   : > { %s3548_s21 = scalar_lea.vmem %s528_s16, 1024  ;;  %p3556_p10 = scmp.lt.s32.totalorder %s528_s16, %s528_s16 }
  0x56   : > { %p3549_p5 = scmp.ne.s32.totalorder %s528_s16, %s3548_s21  ;;  %p3557_p11 = scmp.lt.s32.totalorder %s3548_s21, %s3548_s21 }
  0x58   : > { %p3551_p8 = pnand %p3549_p5, %p3827_p7  ;;  %p3558_p12 = por %p3557_p11, %p3556_p10 }
  0x59   : > { %3210 = dma.hbm_to_vmem [thread:$0]  (!%p3817_p6), %s4398_s7, 1024, %s490_s17, [#allocation10], %s3672_s28, %s3672_s28, %s3673_s18  }
  0x5a   : > { %p3552_p9 = pneg %p3551_p8 }
  0x5c   : > { %p3559_p0 = pnand %p3558_p12, %p3552_p9 }
  0x5e   : > { %3562 = shalt.err (!%p3559_p0)
}
  0x5f   : > { %s4399_s13 = sld [smem:[#allocation29_spill]]  ;;  %s2733_s1 = sadd.s32 4294967294, %s3667_s27  }
  0x60   : > { %s3903_s22 = sadd.s32 1, %s3667_s27   ;;  %s43_s19 = sadd.s32 1, %s3663_s26 }
  0x61   : > { %s40_s29 = ssub.s32 %s3667_s27, %s3903_s22  ;;  %p50_p13 = scmp.ne.s32.totalorder %s3663_s26, %s3659_s25 }
  0x62   : > { %p41_p7 = scmp.eq.s32.totalorder %s40_s29, 0  ;;  %p51_p2 = scmp.eq.s32.totalorder %s3667_s27, 0 }
  0x63   : > { %p56_p5 = scmp.ne.s32.totalorder %s3659_s25, %s3655_s24  ;;  %p416_p9 = scmp.eq.s32.totalorder %s3803_s0, 1 }
  0x64   : > { %s3914_s23 = scalar_select %p41_p7, %s3663_s26, %s43_s19  }
  0x65   : > { %3216 = dma.hbm_to_vmem [thread:$0]  (!%p3817_p6), %s4399_s13, 1024, %s528_s16, [#allocation13], %s3672_s28, %s3672_s28, %s3673_s18  }
  0x66   : > { %4400 = sst [smem:[#allocation22_spill]] %s3914_s23  ;;  %p3916_p8 = por %p51_p2, %p50_p13 }
  0x67   : > { %p3922_p6 = por %p4375_p1, %p56_p5  ;;  %p422_p10 = scmp.eq.s32.totalorder %s2733_s1, 1 }
  0x68   : > { %p3231_p11 = scmp.lt.s32.totalorder %s3667_s27, 2  ;;  %s550_s18 = sand.u32 1, %s3663_s26  }
  0x69   : > { %s4402_s28 = scalar_select %p3922_p6, 1, 0 }
  0x6a   : > { %p3929_p12 = por %p416_p9, %p50_p13  ;;  %p3933_p0 = por %p422_p10, %p56_p5 }
  0x6b   : > { %s2742_s15 = sshll.u32 %s550_s18, 4  ;;  %s2850_s17 = sshll.u32 %s3667_s27, 8 }
  0x6c   : > { %s4403_s16 = scalar_select %p3929_p12, 1, 0 }
  0x6d   : > { %s4404_s21 = scalar_select %p3933_p0, 1, 0 }
  0x6e   : > { %s4405_s3 = sld [smem:[#allocation23_spill]]  ;;  %s554_s1 = scalar_lea.vmem [#allocation3], %s2742_s15 }
  0x6f   : > { %s561_s7 = sshll.u32 %s554_s1, 4  ;;  %p3947_p7 = pnand %p3231_p11, %p3916_p8  ;;  %s3943_s7 = int_to_ptr.vmem [resolvable:$true] %s561_s7 }
  0x70   : > { %s3951_s13 = scalar_lea.sflag [#allocation4], %s550_s18 }
  0x71   : > { %p3565_p2 = pneg %p3947_p7 }
  0x74   : > { %s3941_s5 = scalar_lea.hbm %s4405_s3, %s2850_s17  ;;  %s3568_s15 = scalar_lea.hbm %s4405_s3, 512 }
  0x75   : > { %s3563_s23 = scalar_lea.hbm %s3941_s5, 256  ;;  %p3569_p8 = scmp.lt.s32.totalorder %s3941_s5, %s4405_s3 }
  0x76   : > { %p3564_p13 = scmp.ne.s32.totalorder %s3941_s5, %s3563_s23  ;;  %p3570_p10 = scmp.lt.s32.totalorder %s3568_s15, %s3563_s23 }
  0x78   : > { %p3566_p5 = pnand %p3565_p2, %p3564_p13  ;;  %p3571_p11 = por %p3570_p10, %p3569_p8 }
  0x7a   : > { %p3567_p9 = pneg %p3566_p5 }
  0x7c   : > { %p3572_p4 = pnand %p3571_p11, %p3567_p9 }
  0x7e   : > { %3575 = shalt.err (!%p3572_p4)
}
  0x7f   : > { %s3576_s20 = scalar_lea.vmem %s3943_s7, 256  ;;  %s3677_s18 = smov [#allocation3]  }
  0x80   : > { %p3577_p1 = scmp.ne.s32.totalorder %s3943_s7, %s3576_s20  ;;  %s3581_s26 = sshll.u32 %s3677_s18, 4  ;;  %s3582_s26 = int_to_ptr.vmem [resolvable:$false] %s3581_s26 }
  0x81   : > { %s3583_s17 = scalar_lea.vmem %s3582_s26, 512  ;;  %p3584_p5 = scmp.lt.s32.totalorder %s3943_s7, %s3582_s26 }
  0x82   : > { %p3579_p0 = pnand %p3577_p1, %p3565_p2  ;;  %p3585_p12 = scmp.lt.s32.totalorder %s3583_s17, %s3576_s20 }
  0x84   : > { %p3580_p13 = pneg %p3579_p0  ;;  %p3586_p6 = por %p3585_p12, %p3584_p5 }
  0x86   : > { %p3587_p3 = pnand %p3586_p6, %p3580_p13 }
  0x88   : > { %3590 = shalt.err (!%p3587_p3)
}
  0x89   : > { %s3678_s23 = smov 128   ;;  %s3679_s29 = smov 8  }
  0x8a   : > { %3220 = dma.hbm_to_vmem [thread:$0]  (!%p3947_p7), %s3941_s5, 256, %s3943_s7, %s3951_s13, %s3678_s23, %s3678_s23, %s3679_s29  }
  0x8b   : > { %p4407_p1 = scmp.ne.s32.totalorder %s4391_s30, 0 }
  0x8c   : > { %s3975_s15 = sand.u32 (!%p4407_p1), 1, %s3659_s25   ;;  %p4408_p3 = scmp.ne.s32.totalorder (!%p4407_p1), %s4402_s28, 0 }
  0x8d   : > { %573 = sbr.rel (%p4407_p1) target bundleno = 2436 (0x984), region = 88  ;;  %s2746_s26 = sshll.u32 (!%p4407_p1), %s3975_s15, 4 }
  0x8e   : > { %s576_s19 = scalar_lea.sflag (!%p4407_p1), [#allocation4], %s3975_s15  ;;  %s3981_s1 = scalar_lea.vmem (!%p4407_p1), [#allocation3], %s2746_s26 }
  0x92   : > { %3634 = dma.done.wait (%p4408_p3), %s576_s19, 256  }
  0x93   : > { %3636 = vsyncadd (%p4408_p3), %s576_s19, 4294967040  ;;  %p4409_p4 = scmp.eq.s32.totalorder %s3803_s0, 0 }
  0x95   : > { %3638 = dma.done.wait (%p4409_p4), [#allocation7], 2048   ;;  %p4410_p6 = pmov %p4409_p4 }
  0x96   : > { %p4411_p12 = pmov %p4409_p4 }
  0x97   : > { %3640 = vsyncadd (%p4410_p6), [#allocation7], 4294965248 }
  0x98   : > { %3642 = dma.done.wait (%p4411_p12), [#allocation10], 2048   ;;  %p4412_p0 = pmov %p4409_p4 }
  0x9a   : > { %3644 = vsyncadd (%p4412_p0), [#allocation10], 4294965248  ;;  %p4413_p7 = pmov %p4412_p0 }
  0x9b   : > { %p4414_p2 = pmov %p4412_p0 }
  0x9c   : > { %3646 = dma.done.wait (%p4413_p7), [#allocation13], 2048  }
  0x9d   : > { %3648 = vsyncadd (%p4414_p2), [#allocation13], 4294965248  ;;  %v3680_v0 = vmov 0.0   ;;  %vm3681_vm0 = vmmov 0   ;;  %v3292_v1 = vld [vmem:[#allocation8 + $0x38] sm:$0xff]   ;;  %v3294_v3 = vld [vmem:[#allocation8 + $0x30] sm:$0xff]  }
  0x9e   : > { %2974 = vmatprep.subr.bf16.mxu1 %v3680_v0  ;;  %2954 = vmatprep.subr.bf16.mxu0 %v3680_v0  ;;  %v3293_v2 = vld [vmem:[#allocation6 + $0x38] sm:$0xff]   ;;  %v3295_v4 = vld [vmem:[#allocation6 + $0x30] sm:$0xff]   ;;  %v3296_v5 = vld [vmem:[#allocation8 + $0x28] sm:$0xff]   ;;  %vm1051_vm1 = vcmask 130048   ;;  %s3682_s30 = smov 96   ;;  %s3683_s28 = smov 112  }
  0x9f   : > { %2990 = vmatprep.mubr.msk.bf16.mxu1 %vm3681_vm0, %v3680_v0  ;;  %2970 = vmatprep.mubr.msk.bf16.mxu0 %vm3681_vm0, %v3680_v0  ;;  %v3297_v6 = vld [vmem:[#allocation6 + $0x28] sm:$0xff]   ;;  %v3298_v7 = vld [vmem:[#allocation8 + $0x20] sm:$0xff]   ;;  %v3300_v9 = vld [vmem:[#allocation8 + $0x18] sm:$0xff]   ;;  %s3684_s20 = smov 80   ;;  %s3685_s18 = smov 64   ;;  %vm2012_vm2 = vcmask 125952  }
  0xa0   : > { %2975 = vmatpush3.bf16.msra.mxu1 %v3292_v1  ;;  %2955 = vmatpush3.bf16.msra.mxu0 %v3293_v2  ;;  %v3299_v8 = vld [vmem:[#allocation6 + $0x20] sm:$0xff]   ;;  %v3301_v10 = vld [vmem:[#allocation6 + $0x18] sm:$0xff]   ;;  %v3302_v11 = vld [vmem:[#allocation8 + $0x10] sm:$0xff]   ;;  %s3686_s17 = smov 48   ;;  %s3687_s23 = smov 32   ;;  %vm2027_vm3 = vcmask 257152  }
  0xa1   : > { %2976 = vmatprep.subr.bf16.mxu1 %v3680_v0  ;;  %2956 = vmatprep.subr.bf16.mxu0 %v3680_v0  ;;  %v3303_v12 = vld [vmem:[#allocation6 + $0x10] sm:$0xff]   ;;  %v3304_v13 = vld [vmem:[#allocation8 + $0x8] sm:$0xff]   ;;  %v3306_v15 = vld [vmem:[#allocation8] sm:$0xff]   ;;  %s3688_s29 = smov 16   ;;  %vm2042_vm4 = vcmask 388352   ;;  %vm2057_vm5 = vcmask 519552  }
  0xa2   : > { %v3305_v14 = vld [vmem:[#allocation6 + $0x8] sm:$0xff]   ;;  %v657_v16 = vld [vmem:[%s3981_s1] sm:$0xff]  ;;  %v3308_v20 = vld [vmem:[#allocation9 + $0x38] sm:$0xff]   ;;  %vm2072_vm6 = vcmask 650752   ;;  %vm2087_vm7 = vcmask 781952   ;;  %vm2102_vm8 = vcmask 913152  }
  0xa3   : > { %v658_v17 = vld [vmem:[%s3981_s1 + $0x8] sm:$0xff]  ;;  %v3307_v18 = vld [vmem:[#allocation6] sm:$0xff]   ;;  %v3309_v21 = vld [vmem:[#allocation9 + $0x30] sm:$0xff]   ;;  %vm2117_vm9 = vcmask 1044352   ;;  %s4415_s5 = sld [smem:[#allocation30_spill]]  ;;  %s2867_s13 = sshll.u32 %s3803_s0, 8 }
  0xa4   : > { %2977 = vmatpush3.bf16.msra.mxu1 %v3294_v3  ;;  %2957 = vmatpush3.bf16.msra.mxu0 %v3295_v4  ;;  %v659_v19 = vpack.c.bf16 %v658_v17, %v657_v16  ;;  %v3310_v22 = vld [vmem:[#allocation9 + $0x28] sm:$0xff]   ;;  %v3311_v23 = vld [vmem:[#allocation9 + $0x20] sm:$0xff]   ;;  %v3312_v24 = vld [vmem:[#allocation9 + $0x18] sm:$0xff]   ;;  %p4418_p8 = scmp.ne.s32.totalorder %s4403_s16, 0  ;;  %s3689_s0 = smov [#allocation15]  }
  0xa5   : > { %2978 = vmatprep.subr.bf16.mxu1 %v3680_v0  ;;  %2958 = vmatprep.subr.bf16.mxu0 %v3680_v0  ;;  %v3313_v25 = vld [vmem:[#allocation9 + $0x10] sm:$0xff]   ;;  %v3314_v26 = vld [vmem:[#allocation9 + $0x8] sm:$0xff]   ;;  %v3315_v27 = vld [vmem:[#allocation9] sm:$0xff]  }
  0xa6   : > { %v2763_v30 = vld [vmem:[%s4359_s4] ss:$0 sm:$0xff] }
  0xa7   : > { %v2754_v32 = vld [vmem:[%s4357_s2] ss:$0 sm:$0xff] }
  0xa8   : > { %2979 = vmatpush3.bf16.msra.mxu1 %v3296_v5  ;;  %2959 = vmatpush3.bf16.msra.mxu0 %v3297_v6  ;;  %v2772_v50 = vld [vmem:[%s4361_s6] ss:$0 sm:$0xff] }
  0xa9   : > { %2980 = vmatprep.subr.bf16.mxu1 %v3680_v0  ;;  %2960 = vmatprep.subr.bf16.mxu0 %v3680_v0 }
  0xac   : > { %2981 = vmatpush3.bf16.msra.mxu1 %v3298_v7  ;;  %2961 = vmatpush3.bf16.msra.mxu0 %v3299_v8 }
  0xad   : > { %2982 = vmatprep.subr.bf16.mxu1 %v3680_v0  ;;  %2962 = vmatprep.subr.bf16.mxu0 %v3680_v0 }
  0xb0   : > { %2983 = vmatpush3.bf16.msra.mxu1 %v3300_v9  ;;  %2963 = vmatpush3.bf16.msra.mxu0 %v3301_v10 }
  0xb1   : > { %2984 = vmatprep.subr.bf16.mxu1 %v3680_v0  ;;  %2964 = vmatprep.subr.bf16.mxu0 %v3680_v0 }
  0xb4   : > { %2985 = vmatpush3.bf16.msra.mxu1 %v3302_v11  ;;  %2965 = vmatpush3.bf16.msra.mxu0 %v3303_v12 }
  0xb5   : > { %2986 = vmatprep.subr.bf16.mxu1 %v3680_v0  ;;  %2966 = vmatprep.subr.bf16.mxu0 %v3680_v0 }
  0xb8   : > { %2987 = vmatpush3.bf16.msra.mxu1 %v3304_v13  ;;  %2967 = vmatpush3.bf16.msra.mxu0 %v3305_v14 }
  0xb9   : > { %2988 = vmatprep.subr.bf16.mxu1 %v3680_v0  ;;  %2968 = vmatprep.subr.bf16.mxu0 %v3680_v0 }
  0xbc   : > { %2989 = vmatpush3.bf16.msra.mxu1 %v3306_v15  ;;  %2969 = vmatpush3.bf16.msra.mxu0 %v3307_v18 }
  0xbd   : > { %3014 = vmatprep.subr.bf16.mxu1 %v3680_v0  ;;  %2994 = vmatprep.subr.bf16.mxu0 %v3680_v0 }
  0xbf   : > { %2991 = vmatmul.mubr.bf16.vlgmr.msra.gmra.mxu1 %v659_v19  ;;  %2971 = vmatmul.mubr.bf16.vlgmr.msra.gmra.mxu0 %v659_v19 }
  0xc0   : > { %3016 = vmatprep.mubr.msk.bf16.mxu1 %vm3681_vm0, %v3680_v0  ;;  %3010 = vmatprep.mubr.msk.bf16.mxu0 %vm3681_vm0, %v3680_v0 }
  0xc1   : > { %2995 = vmatpush3.bf16.msra.mxu0 %v3308_v20 }
  0xc2   : > { %2996 = vmatprep.subr.bf16.mxu0 %v3680_v0 }
  0xc5   : > { %2997 = vmatpush3.bf16.msra.mxu0 %v3309_v21 }
  0xc6   : > { %2998 = vmatprep.subr.bf16.mxu0 %v3680_v0 }
  0xc9   : > { %2999 = vmatpush3.bf16.msra.mxu0 %v3310_v22 }
  0xca   : > { %3000 = vmatprep.subr.bf16.mxu0 %v3680_v0 }
  0xcd   : > { %3001 = vmatpush3.bf16.msra.mxu0 %v3311_v23 }
  0xce   : > { %3002 = vmatprep.subr.bf16.mxu0 %v3680_v0 }
  0xd1   : > { %3003 = vmatpush3.bf16.msra.mxu0 %v3312_v24 }
  0xd2   : > { %3004 = vmatprep.subr.bf16.mxu0 %v3680_v0 }
  0xd5   : > { %3005 = vmatpush3.bf16.msra.mxu0 %v3313_v25 }
  0xd6   : > { %3006 = vmatprep.subr.bf16.mxu0 %v3680_v0 }
  0xd9   : > { %3007 = vmatpush3.bf16.msra.mxu0 %v3314_v26 }
  0xda   : > { %3008 = vmatprep.subr.bf16.mxu0 %v3680_v0 }
  0xdd   : > { %3009 = vmatpush3.bf16.msra.mxu0 %v3315_v27 }
  0xde   : > { %3062 = vmatprep.subr.bf16.mxu0 %v3680_v0 }
  0xe0   : > { %3011 = vmatmul.mubr.bf16.vlgmr.msra.gmra.mxu0 %v659_v19 }
  0xe1   : > { %3064 = vmatprep.mubr.msk.bf16.mxu0 %vm3681_vm0, %v3680_v0 }
 0x17f   : > { %v878_v28 = vpop.f32.mrf.mxu1  ;;  %v765_v29 = vpop.f32.mrf.mxu0 }
 0x180   : > { %v879_v35 = vadd.f32 %v2763_v30, %v878_v28  ;;  %v766_v36 = vadd.f32 %v2754_v32, %v765_v29 }
 0x181   : > { %v2992_v31 = vpop.f32.mrf.mxu1  ;;  %v2972_v33 = vpop.f32.mrf.mxu0 }
 0x183   : > { %v881_v34 = vpop.f32.mrf.mxu1  ;;  %v768_v38 = vpop.f32.mrf.mxu0 }
 0x184   : > { %v882_v37 = vadd.f32 %v2763_v30, %v881_v34  ;;  %v769_v40 = vadd.f32 %v2754_v32, %v768_v38 }
 0x185   : > { %v2993_v39 = vpop.f32.mrf.mxu1  ;;  %v2973_v42 = vpop.f32.mrf.mxu0 }
 0x186   : > { %v885_v41 = vpack.c.bf16 %v882_v37, %v879_v35  ;;  %v772_v43 = vpack.c.bf16 %v769_v40, %v766_v36 }
 0x188   : > { %1017 = vrot.lane.b32.xlu1 %v885_v41, %s3682_s30  ;;  %1015 = vrot.lane.b32.xlu0 %v885_v41, %s3683_s28  ;;  %v1056_v44 = vsel %vm1051_vm1, %v885_v41, 0 }
 0x189   : > { %3015 = vmatpush3.bf16.xpose.msra.mxu1 %v1056_v44 }
 0x18a   : > { %3020 = vmatprep.subr.bf16.mxu1 %v3680_v0 }
 0x18c   : > { %1002 = vrot.lane.b32.xlu1 %v772_v43, %s3682_s30  ;;  %1000 = vrot.lane.b32.xlu0 %v772_v43, %s3683_s28 }
 0x190   : > { %1004 = vrot.lane.b32.xlu1 %v772_v43, %s3684_s20  ;;  %1019 = vrot.lane.b32.xlu0 %v885_v41, %s3684_s20 }
 0x191   : > { %3017 = vmatmul.mubr.msk.bf16.vlgmr.msra.gmra.mxu1 %vm1051_vm1, %v772_v43 }
 0x192   : > { %3022 = vmatprep.mubr.msk.bf16.mxu1 %vm3681_vm0, %v3680_v0 }
 0x194   : > { %1006 = vrot.lane.b32.xlu1 %v772_v43, %s3685_s18  ;;  %1021 = vrot.lane.b32.xlu0 %v885_v41, %s3685_s18 }
 0x198   : > { %1008 = vrot.lane.b32.xlu1 %v772_v43, %s3686_s17  ;;  %1023 = vrot.lane.b32.xlu0 %v885_v41, %s3686_s17 }
 0x19c   : > { %1010 = vrot.lane.b32.xlu1 %v772_v43, %s3687_s23  ;;  %1025 = vrot.lane.b32.xlu0 %v885_v41, %s3687_s23 }
 0x1a0   : > { %1012 = vrot.lane.b32.xlu1 %v772_v43, %s3688_s29  ;;  %1027 = vrot.lane.b32.xlu0 %v885_v41, %s3688_s29  ;;  %v991_v51 = vpop.f32.mrf.mxu0 }
 0x1a1   : > { %v992_v55 = vadd.f32 %v2772_v50, %v991_v51 }
 0x1a2   : > { %v3012_v53 = vpop.f32.mrf.mxu0 }
 0x1a4   : > { %v994_v57 = vpop.f32.mrf.mxu0 }
 0x1a5   : > { %v995_v58 = vadd.f32 %v2772_v50, %v994_v57 }
 0x1a6   : > { %v3013_v59 = vpop.f32.mrf.mxu0 }
 0x1a7   : > { %v998_v60 = vpack.c.bf16 %v995_v58, %v992_v55 }
 0x1a9   : > { %1030 = vrot.lane.b32.xlu0 %v998_v60, %s3683_s28  ;;  %3063 = vmatpush3.bf16.msra.mxu0 %v998_v60 }
 0x1aa   : > { %1033 = vrot.lane.b32.xlu1 %v998_v60, %s3682_s30  ;;  %3074 = vmatprep.subr.bf16.mxu0 %v3680_v0 }
 0x1ad   : > { %1036 = vrot.lane.b32.xlu0 %v998_v60, %s3684_s20 }
 0x1ae   : > { %1039 = vrot.lane.b32.xlu1 %v998_v60, %s3685_s18 }
 0x1b1   : > { %1042 = vrot.lane.b32.xlu0 %v998_v60, %s3686_s17 }
 0x1b2   : > { %1045 = vrot.lane.b32.xlu1 %v998_v60, %s3687_s23 }
 0x1b5   : > { %1048 = vrot.lane.b32.xlu0 %v998_v60, %s3688_s29 }
 0x1fa   : > { %v1016_v45 = vpop.permute.xlu0 %1015  ;;  %v1018_v47 = vpop.permute.xlu1 %1017 }
 0x1fb   : > { %v1103_v46 = vsel %vm1051_vm1, %v1016_v45, 0  ;;  %v1150_v49 = vsel %vm1051_vm1, %v1018_v47, 0 }
 0x1fc   : > { %3021 = vmatpush3.bf16.xpose.msra.mxu1 %v1103_v46 }
 0x1fd   : > { %3026 = vmatprep.subr.bf16.mxu1 %v3680_v0 }
 0x1fe   : > { %v1001_v48 = vpop.permute.xlu0 %1000  ;;  %v1003_v54 = vpop.permute.xlu1 %1002 }
 0x202   : > { %v1020_v52 = vpop.permute.xlu0 %1019  ;;  %v1005_v62 = vpop.permute.xlu1 %1004 }
 0x203   : > { %3023 = vmatmul.mubr.msk.bf16.vlgmr.msra.gmra.mxu1 %vm1051_vm1, %v1001_v48  ;;  %v1197_v56 = vsel %vm1051_vm1, %v1020_v52, 0 }
 0x204   : > { %3027 = vmatpush3.bf16.xpose.msra.mxu1 %v1150_v49  ;;  %3028 = vmatprep.mubr.msk.bf16.mxu1 %vm3681_vm0, %v3680_v0 }
 0x205   : > { %3032 = vmatprep.subr.bf16.mxu1 %v3680_v0 }
 0x206   : > { %v1022_v61 = vpop.permute.xlu0 %1021  ;;  %v1007_v2 = vpop.permute.xlu1 %1006 }
 0x207   : > { %v1244_v63 = vsel %vm1051_vm1, %v1022_v61, 0 }
 0x20a   : > { %v1024_v1 = vpop.permute.xlu0 %1023  ;;  %v1009_v5 = vpop.permute.xlu1 %1008 }
 0x20b   : > { %3029 = vmatmul.mubr.msk.bf16.vlgmr.msra.gmra.mxu1 %vm1051_vm1, %v1003_v54  ;;  %v1291_v3 = vsel %vm1051_vm1, %v1024_v1, 0 }
 0x20c   : > { %3033 = vmatpush3.bf16.xpose.msra.mxu1 %v1197_v56  ;;  %3034 = vmatprep.mubr.msk.bf16.mxu1 %vm3681_vm0, %v3680_v0 }
 0x20d   : > { %3038 = vmatprep.subr.bf16.mxu1 %v3680_v0 }
 0x20e   : > { %v1026_v4 = vpop.permute.xlu0 %1025  ;;  %v1011_v8 = vpop.permute.xlu1 %1010 }
 0x20f   : > { %v1338_v6 = vsel %vm1051_vm1, %v1026_v4, 0 }
 0x212   : > { %v1028_v7 = vpop.permute.xlu0 %1027  ;;  %v1013_v10 = vpop.permute.xlu1 %1012 }
 0x213   : > { %3035 = vmatmul.mubr.msk.bf16.vlgmr.msra.gmra.mxu1 %vm1051_vm1, %v1005_v62  ;;  %v1385_v9 = vsel %vm1051_vm1, %v1028_v7, 0 }
 0x214   : > { %3039 = vmatpush3.bf16.xpose.msra.mxu1 %v1244_v63  ;;  %3040 = vmatprep.mubr.msk.bf16.mxu1 %vm3681_vm0, %v3680_v0 }
 0x215   : > { %3044 = vmatprep.subr.bf16.mxu1 %v3680_v0 }
 0x21b   : > { %3041 = vmatmul.mubr.msk.bf16.vlgmr.msra.gmra.mxu1 %vm1051_vm1, %v1007_v2  ;;  %v1031_v39 = vpop.permute.xlu0 %1030 }
 0x21c   : > { %3045 = vmatpush3.bf16.xpose.msra.mxu1 %v1291_v3  ;;  %3046 = vmatprep.mubr.msk.bf16.mxu1 %vm3681_vm0, %v3680_v0  ;;  %v1034_v44 = vpop.permute.xlu1 %1033 }
 0x21d   : > { %3050 = vmatprep.subr.bf16.mxu1 %v3680_v0 }
 0x223   : > { %3047 = vmatmul.mubr.msk.bf16.vlgmr.msra.gmra.mxu1 %vm1051_vm1, %v1009_v5 }
 0x224   : > { %3051 = vmatpush3.bf16.xpose.msra.mxu1 %v1338_v6  ;;  %3052 = vmatprep.mubr.msk.bf16.mxu1 %vm3681_vm0, %v3680_v0 }
 0x225   : > { %3056 = vmatprep.subr.bf16.mxu1 %v3680_v0 }
 0x22b   : > { %3053 = vmatmul.mubr.msk.bf16.vlgmr.msra.gmra.mxu1 %vm1051_vm1, %v1011_v8 }
 0x22c   : > { %3057 = vmatpush3.bf16.xpose.msra.mxu1 %v1385_v9  ;;  %3058 = vmatprep.mubr.msk.bf16.mxu1 %vm3681_vm0, %v3680_v0 }
 0x22d   : > { %3068 = vmatprep.subr.bf16.mxu1 %v3680_v0 }
 0x233   : > { %3059 = vmatmul.mubr.msk.bf16.vlgmr.msra.gmra.mxu1 %vm1051_vm1, %v1013_v10 }
 0x234   : > { %3070 = vmatprep.mubr.msk.bf16.mxu1 %vm3681_vm0, %v3680_v0  ;;  %3069 = vmatpush3.bf16.msra.mxu1 %v1031_v39 }
 0x235   : > { %3080 = vmatprep.subr.bf16.mxu1 %v3680_v0 }
 0x251   : > { %v1092_v11 = vpop.f32.mrf.mxu1 }
 0x252   : > { %v1428_v14 = vsel %vm1051_vm1, %v1092_v11, -inf }
 0x253   : > { %v3018_v12 = vpop.f32.mrf.mxu1 }
 0x255   : > { %v1095_v13 = vpop.f32.mrf.mxu1 }
 0x256   : > { %v1429_v15 = vsel %vm1051_vm1, %v1095_v13, -inf }
 0x257   : > { %v1430_v16 = vmax.f32 %v1428_v14, %v1429_v15  ;;  %v3019_v17 = vpop.f32.mrf.mxu1 }
 0x259   : > { %v1431_v18 = vrot.slane %v1430_v16, 4 }
 0x25b   : > { %v1432_v19 = vmax.f32 %v1430_v16, %v1431_v18 }
 0x25d   : > { %v1433_v20 = vrot.slane %v1432_v19, 2 }
 0x25f   : > { %v1434_v21 = vmax.f32 %v1432_v19, %v1433_v20 }
 0x261   : > { %v1435_v22 = vrot.slane %v1434_v21, 1 }
 0x263   : > { %v1436_v23 = vmax.f32 %v1434_v21, %v1435_v22 }
 0x265   : > { %v1500_v24 = vsub.f32 %v1092_v11, %v1436_v23  ;;  %v1501_v25 = vsub.f32 %v1095_v13, %v1436_v23 }
 0x267   : > { %v1516_v26 = vmul.f32 1.442695, %v1500_v24  ;;  %v1518_v27 = vmul.f32 1.442695, %v1501_v25 }
 0x269   : > { %3341 = vpow2.f32 %v1516_v26 }
 0x26a   : > { %3343 = vpow2.f32 %v1518_v27 }
 0x276   : > { %v3342_v28 = vpop.eup %3341 }
 0x277   : > { %v3344_v29 = vpop.eup %3343  ;;  %v1548_v30 = vsel %vm1051_vm1, %v3342_v28, 0.0 }
 0x278   : > { %v1549_v31 = vsel %vm1051_vm1, %v3344_v29, 0.0 }
 0x279   : > { %v1550_v32 = vadd.f32 %v1549_v31, %v1548_v30 }
 0x27b   : > { %v1551_v33 = vrot.slane %v1550_v32, 4 }
 0x27d   : > { %v1552_v34 = vadd.f32 %v1551_v33, %v1550_v32 }
 0x27f   : > { %v1553_v35 = vrot.slane %v1552_v34, 2 }
 0x281   : > { %v1554_v36 = vadd.f32 %v1553_v35, %v1552_v34 }
 0x283   : > { %v1555_v37 = vrot.slane %v1554_v36, 1 }
 0x285   : > { %v1556_v38 = vadd.f32 %v1555_v37, %v1554_v36 }
 0x287   : > { %3345 = vrcp.f32 %v1556_v38 }
 0x294   : > { %v3346_v40 = vpop.eup %3345 }
 0x295   : > { %v1628_v41 = vmul.f32 %v3346_v40, %v3342_v28  ;;  %v1629_v42 = vmul.f32 %v3346_v40, %v3344_v29 }
 0x297   : > { %v1644_v43 = vpack.c.bf16 %v1629_v42, %v1628_v41 }
 0x299   : > { %3065 = vmatmul.mubr.msk.bf16.vlgmr.msra.gmra.mxu0 %vm1051_vm1, %v1644_v43 }
 0x29a   : > { %3075 = vmatpush3.bf16.msra.mxu0 %v1034_v44  ;;  %3076 = vmatprep.mubr.msk.bf16.mxu0 %vm3681_vm0, %v3680_v0 }
 0x29b   : > { %3086 = vmatprep.subr.bf16.mxu0 %v3680_v0 }
 0x2c3   : > { %v1139_v45 = vpop.f32.mrf.mxu1 }
 0x2c4   : > { %v1437_v48 = vsel %vm1051_vm1, %v1139_v45, -inf }
 0x2c5   : > { %v3024_v46 = vpop.f32.mrf.mxu1 }
 0x2c7   : > { %v1142_v47 = vpop.f32.mrf.mxu1 }
 0x2c8   : > { %v1438_v49 = vsel %vm1051_vm1, %v1142_v47, -inf }
 0x2c9   : > { %v1439_v50 = vmax.f32 %v1437_v48, %v1438_v49  ;;  %v3025_v51 = vpop.f32.mrf.mxu1 }
 0x2cb   : > { %v1440_v52 = vrot.slane %v1439_v50, 4  ;;  %v1186_v53 = vpop.f32.mrf.mxu1 }
 0x2cc   : > { %v1446_v58 = vsel %vm1051_vm1, %v1186_v53, -inf }
 0x2cd   : > { %v1441_v54 = vmax.f32 %v1439_v50, %v1440_v52  ;;  %v3030_v55 = vpop.f32.mrf.mxu1 }
 0x2cf   : > { %v1442_v56 = vrot.slane %v1441_v54, 2  ;;  %v1189_v57 = vpop.f32.mrf.mxu1 }
 0x2d0   : > { %v1447_v59 = vsel %vm1051_vm1, %v1189_v57, -inf }
 0x2d1   : > { %v1443_v60 = vmax.f32 %v1441_v54, %v1442_v56  ;;  %v1448_v61 = vmax.f32 %v1446_v58, %v1447_v59  ;;  %v3031_v62 = vpop.f32.mrf.mxu1 }
 0x2d3   : > { %v1444_v63 = vrot.slane %v1443_v60, 1  ;;  %v1449_v1 = vrot.slane %v1448_v61, 4  ;;  %v1233_v2 = vpop.f32.mrf.mxu1 }
 0x2d4   : > { %v1455_v10 = vsel %vm1051_vm1, %v1233_v2, -inf }
 0x2d5   : > { %v1445_v3 = vmax.f32 %v1443_v60, %v1444_v63  ;;  %v1450_v4 = vmax.f32 %v1448_v61, %v1449_v1  ;;  %v3036_v5 = vpop.f32.mrf.mxu1 }
 0x2d7   : > { %v1502_v6 = vsub.f32 %v1139_v45, %v1445_v3  ;;  %v1503_v7 = vsub.f32 %v1142_v47, %v1445_v3  ;;  %v1451_v8 = vrot.slane %v1450_v4, 2  ;;  %v1236_v9 = vpop.f32.mrf.mxu1 }
 0x2d8   : > { %v1456_v11 = vsel %vm1051_vm1, %v1236_v9, -inf }
 0x2d9   : > { %v1520_v12 = vmul.f32 1.442695, %v1502_v6  ;;  %v1522_v13 = vmul.f32 1.442695, %v1503_v7  ;;  %v1452_v14 = vmax.f32 %v1450_v4, %v1451_v8  ;;  %v1457_v15 = vmax.f32 %v1455_v10, %v1456_v11  ;;  %v3037_v16 = vpop.f32.mrf.mxu1 }
 0x2db   : > { %3347 = vpow2.f32 %v1520_v12  ;;  %v1453_v17 = vrot.slane %v1452_v14, 1  ;;  %v1458_v18 = vrot.slane %v1457_v15, 4  ;;  %v1280_v19 = vpop.f32.mrf.mxu1 }
 0x2dc   : > { %3349 = vpow2.f32 %v1522_v13  ;;  %v1464_v27 = vsel %vm1051_vm1, %v1280_v19, -inf }
 0x2dd   : > { %v1454_v20 = vmax.f32 %v1452_v14, %v1453_v17  ;;  %v1459_v21 = vmax.f32 %v1457_v15, %v1458_v18  ;;  %v3042_v22 = vpop.f32.mrf.mxu1 }
 0x2df   : > { %v1504_v23 = vsub.f32 %v1186_v53, %v1454_v20  ;;  %v1505_v24 = vsub.f32 %v1189_v57, %v1454_v20  ;;  %v1460_v25 = vrot.slane %v1459_v21, 2  ;;  %v1283_v26 = vpop.f32.mrf.mxu1 }
 0x2e0   : > { %v1465_v28 = vsel %vm1051_vm1, %v1283_v26, -inf }
 0x2e1   : > { %v1524_v29 = vmul.f32 1.442695, %v1504_v23  ;;  %v1526_v30 = vmul.f32 1.442695, %v1505_v24  ;;  %v1461_v31 = vmax.f32 %v1459_v21, %v1460_v25  ;;  %v1466_v32 = vmax.f32 %v1464_v27, %v1465_v28  ;;  %v3043_v33 = vpop.f32.mrf.mxu1 }
 0x2e3   : > { %3351 = vpow2.f32 %v1524_v29  ;;  %v1462_v34 = vrot.slane %v1461_v31, 1  ;;  %v1467_v35 = vrot.slane %v1466_v32, 4  ;;  %v4125_v36 = vpop.f32.mrf.mxu1 }
 0x2e4   : > { %3353 = vpow2.f32 %v1526_v30  ;;  %v1473_v45 = vsel %vm1051_vm1, %v4125_v36, -inf }
 0x2e5   : > { %v1463_v37 = vmax.f32 %v1461_v31, %v1462_v34  ;;  %v1468_v38 = vmax.f32 %v1466_v32, %v1467_v35  ;;  %v3048_v39 = vpop.f32.mrf.mxu1 }
 0x2e7   : > { %v1506_v40 = vsub.f32 %v1233_v2, %v1463_v37  ;;  %v1507_v41 = vsub.f32 %v1236_v9, %v1463_v37  ;;  %v1469_v42 = vrot.slane %v1468_v38, 2  ;;  %v4127_v43 = vpop.f32.mrf.mxu1 }
 0x2e8   : > { %v4129_v44 = vpop.eup %3347  ;;  %v1474_v46 = vsel %vm1051_vm1, %v4127_v43, -inf }
 0x2e9   : > { %v4135_v47 = vpop.eup %3349  ;;  %v1557_v48 = vsel %vm1051_vm1, %v4129_v44, 0.0  ;;  %v1528_v49 = vmul.f32 1.442695, %v1506_v40  ;;  %v1530_v50 = vmul.f32 1.442695, %v1507_v41  ;;  %v1470_v51 = vmax.f32 %v1468_v38, %v1469_v42  ;;  %v3049_v52 = vpop.f32.mrf.mxu1 }
 0x2ea   : > { %v1558_v53 = vsel %vm1051_vm1, %v4135_v47, 0.0  ;;  %v1475_v54 = vmax.f32 %v1473_v45, %v1474_v46 }
 0x2eb   : > { %v1559_v55 = vadd.f32 %v1558_v53, %v1557_v48  ;;  %3355 = vpow2.f32 %v1528_v49  ;;  %v1471_v56 = vrot.slane %v1470_v51, 1  ;;  %v4141_v57 = vpop.f32.mrf.mxu1 }
 0x2ec   : > { %3357 = vpow2.f32 %v1530_v50  ;;  %v1476_v58 = vrot.slane %v1475_v54, 4  ;;  %v1482_v6 = vsel %vm1051_vm1, %v4141_v57, -inf }
 0x2ed   : > { %v1560_v59 = vrot.slane %v1559_v55, 4  ;;  %v1472_v60 = vmax.f32 %v1470_v51, %v1471_v56  ;;  %v3054_v61 = vpop.f32.mrf.mxu1 }
 0x2ee   : > { %v1477_v62 = vmax.f32 %v1475_v54, %v1476_v58 }
 0x2ef   : > { %v1561_v63 = vadd.f32 %v1560_v59, %v1559_v55  ;;  %v1508_v1 = vsub.f32 %v1280_v19, %v1472_v60  ;;  %v1509_v2 = vsub.f32 %v1283_v26, %v1472_v60  ;;  %v4143_v3 = vpop.f32.mrf.mxu1 }
 0x2f0   : > { %v4145_v4 = vpop.eup %3351  ;;  %v1478_v5 = vrot.slane %v1477_v62, 2  ;;  %v1483_v7 = vsel %vm1051_vm1, %v4143_v3, -inf }
 0x2f1   : > { %v4151_v8 = vpop.eup %3353  ;;  %v1562_v9 = vrot.slane %v1561_v63, 2  ;;  %v1566_v10 = vsel %vm1051_vm1, %v4145_v4, 0.0  ;;  %v1532_v11 = vmul.f32 1.442695, %v1508_v1  ;;  %v1534_v12 = vmul.f32 1.442695, %v1509_v2  ;;  %v3055_v13 = vpop.f32.mrf.mxu1 }
 0x2f2   : > { %v1567_v14 = vsel %vm1051_vm1, %v4151_v8, 0.0  ;;  %v1479_v15 = vmax.f32 %v1477_v62, %v1478_v5  ;;  %v1484_v16 = vmax.f32 %v1482_v6, %v1483_v7 }
 0x2f3   : > { %v1563_v17 = vadd.f32 %v1562_v9, %v1561_v63  ;;  %v1568_v18 = vadd.f32 %v1567_v14, %v1566_v10  ;;  %3359 = vpow2.f32 %v1532_v11  ;;  %v4157_v19 = vpop.f32.mrf.mxu1 }
 0x2f4   : > { %3361 = vpow2.f32 %v1534_v12  ;;  %v1480_v20 = vrot.slane %v1479_v15, 1  ;;  %v1485_v21 = vrot.slane %v1484_v16, 4  ;;  %v1491_v29 = vsel %vm1051_vm1, %v4157_v19, -inf }
 0x2f5   : > { %v1564_v22 = vrot.slane %v1563_v17, 1  ;;  %v1569_v23 = vrot.slane %v1568_v18, 4  ;;  %v3060_v24 = vpop.f32.mrf.mxu1 }
 0x2f6   : > { %v1481_v25 = vmax.f32 %v1479_v15, %v1480_v20  ;;  %v1486_v26 = vmax.f32 %v1484_v16, %v1485_v21 }
 0x2f7   : > { %v1565_v27 = vadd.f32 %v1564_v22, %v1563_v17  ;;  %v1570_v28 = vadd.f32 %v1569_v23, %v1568_v18  ;;  %v1424_v30 = vpop.f32.mrf.mxu1 }
 0x2f8   : > { %v4161_v31 = vpop.eup %3355  ;;  %v1510_v32 = vsub.f32 %v4125_v36, %v1481_v25  ;;  %v1511_v33 = vsub.f32 %v4127_v43, %v1481_v25  ;;  %v1487_v34 = vrot.slane %v1486_v26, 2  ;;  %v1492_v35 = vsel %vm1051_vm1, %v1424_v30, -inf }
 0x2f9   : > { %v4166_v37 = vpop.eup %3357  ;;  %3363 = vrcp.f32 %v1565_v27  ;;  %v1571_v38 = vrot.slane %v1570_v28, 2  ;;  %v1575_v39 = vsel %vm1051_vm1, %v4161_v31, 0.0  ;;  %v1493_v40 = vmax.f32 %v1491_v29, %v1492_v35  ;;  %v3061_v41 = vpop.f32.mrf.mxu1 }
 0x2fa   : > { %v1576_v42 = vsel %vm1051_vm1, %v4166_v37, 0.0  ;;  %v1536_v45 = vmul.f32 1.442695, %v1510_v32  ;;  %v1538_v46 = vmul.f32 1.442695, %v1511_v33  ;;  %v1488_v36 = vmax.f32 %v1486_v26, %v1487_v34 }
 0x2fb   : > { %v1572_v48 = vadd.f32 %v1571_v38, %v1570_v28  ;;  %v1577_v43 = vadd.f32 %v1576_v42, %v1575_v39  ;;  %v1494_v49 = vrot.slane %v1493_v40, 4 }
 0x2fc   : > { %3365 = vpow2.f32 %v1536_v45  ;;  %v1489_v50 = vrot.slane %v1488_v36, 1 }
 0x2fd   : > { %v1573_v51 = vrot.slane %v1572_v48, 1  ;;  %v1578_v52 = vrot.slane %v1577_v43, 4  ;;  %3367 = vpow2.f32 %v1538_v46  ;;  %v1495_v53 = vmax.f32 %v1493_v40, %v1494_v49 }
 0x2fe   : > { %v1490_v54 = vmax.f32 %v1488_v36, %v1489_v50  ;;  %v1040_v36 = vpop.permute.xlu1 %1039 }
 0x2ff   : > { %v1574_v55 = vadd.f32 %v1573_v51, %v1572_v48  ;;  %v1579_v56 = vadd.f32 %v1578_v52, %v1577_v43  ;;  %v1496_v58 = vrot.slane %v1495_v53, 2 }
 0x300   : > { %v4172_v59 = vpop.eup %3359  ;;  %v1512_v60 = vsub.f32 %v4141_v57, %v1490_v54  ;;  %v1513_v61 = vsub.f32 %v4143_v3, %v1490_v54 }
 0x301   : > { %v4176_v62 = vpop.eup %3361  ;;  %3369 = vrcp.f32 %v1574_v55  ;;  %v1580_v63 = vrot.slane %v1579_v56, 2  ;;  %v1584_v1 = vsel %vm1051_vm1, %v4172_v59, 0.0  ;;  %v1497_v2 = vmax.f32 %v1495_v53, %v1496_v58 }
 0x302   : > { %v1585_v5 = vsel %vm1051_vm1, %v4176_v62, 0.0  ;;  %v1540_v6 = vmul.f32 1.442695, %v1512_v60  ;;  %v1542_v7 = vmul.f32 1.442695, %v1513_v61 }
 0x303   : > { %v1581_v9 = vadd.f32 %v1580_v63, %v1579_v56  ;;  %v1586_v10 = vadd.f32 %v1585_v5, %v1584_v1  ;;  %v1498_v11 = vrot.slane %v1497_v2, 1 }
 0x304   : > { %3371 = vpow2.f32 %v1540_v6 }
 0x305   : > { %v1582_v57 = vrot.slane %v1581_v9, 1  ;;  %v1587_v12 = vrot.slane %v1586_v10, 4  ;;  %3373 = vpow2.f32 %v1542_v7  ;;  %v1499_v3 = vmax.f32 %v1497_v2, %v1498_v11 }
 0x306   : > { %v3364_v13 = vpop.eup %3363 }
 0x307   : > { %v1583_v14 = vadd.f32 %v1582_v57, %v1581_v9  ;;  %v1588_v15 = vadd.f32 %v1587_v12, %v1586_v10  ;;  %v1514_v16 = vsub.f32 %v4157_v19, %v1499_v3  ;;  %v1515_v17 = vsub.f32 %v1424_v30, %v1499_v3  ;;  %v1046_v3 = vpop.permute.xlu1 %1045 }
 0x308   : > { %v1630_v18 = vmul.f32 %v3364_v13, %v4129_v44  ;;  %v1631_v20 = vmul.f32 %v3364_v13, %v4135_v47  ;;  %v1037_v47 = vpop.permute.xlu0 %1036 }
 0x309   : > { %v4185_v21 = vpop.eup %3365  ;;  %3375 = vrcp.f32 %v1583_v14  ;;  %v1589_v22 = vrot.slane %v1588_v15, 2  ;;  %v1544_v23 = vmul.f32 1.442695, %v1514_v16  ;;  %v1546_v24 = vmul.f32 1.442695, %v1515_v17 }
 0x30a   : > { %v4187_v25 = vpop.eup %3367  ;;  %v1593_v26 = vsel %vm1051_vm1, %v4185_v21, 0.0  ;;  %v1645_v27 = vpack.c.bf16 %v1631_v20, %v1630_v18 }
 0x30b   : > { %v1590_v28 = vadd.f32 %v1589_v22, %v1588_v15  ;;  %v1594_v19 = vsel %vm1051_vm1, %v4187_v25, 0.0  ;;  %3377 = vpow2.f32 %v1544_v23 }
 0x30c   : > { %v1595_v44 = vadd.f32 %v1594_v19, %v1593_v26  ;;  %3379 = vpow2.f32 %v1546_v24  ;;  %3071 = vmatmul.mubr.msk.bf16.vlgmr.msra.gmra.mxu1 %vm1051_vm1, %v1645_v27  ;;  %v1043_v1 = vpop.permute.xlu0 %1042 }
 0x30d   : > { %v1591_v29 = vrot.slane %v1590_v28, 1  ;;  %3081 = vmatpush3.bf16.msra.mxu1 %v1037_v47  ;;  %3082 = vmatprep.mubr.msk.bf16.mxu1 %vm3681_vm0, %v3680_v0 }
 0x30e   : > { %v3370_v30 = vpop.eup %3369  ;;  %v1596_v32 = vrot.slane %v1595_v44, 4  ;;  %3092 = vmatprep.subr.bf16.mxu1 %v3680_v0 }
 0x30f   : > { %v1592_v33 = vadd.f32 %v1591_v29, %v1590_v28  ;;  %v1632_v34 = vmul.f32 %v3370_v30, %v4145_v4  ;;  %v1633_v35 = vmul.f32 %v3370_v30, %v4151_v8 }
 0x310   : > { %v1597_v38 = vadd.f32 %v1596_v32, %v1595_v44  ;;  %v1049_v17 = vpop.permute.xlu0 %1048 }
 0x311   : > { %v4199_v39 = vpop.eup %3371  ;;  %3381 = vrcp.f32 %v1592_v33  ;;  %v1646_v40 = vpack.c.bf16 %v1633_v35, %v1632_v34 }
 0x312   : > { %v3374_v41 = vpop.eup %3373  ;;  %v1598_v42 = vrot.slane %v1597_v38, 2  ;;  %v1602_v45 = vsel %vm1051_vm1, %v4199_v39, 0.0 }
 0x313   : > { %v1603_v46 = vsel %vm1051_vm1, %v3374_v41, 0.0  ;;  %3077 = vmatmul.mubr.msk.bf16.vlgmr.msra.gmra.mxu0 %vm1051_vm1, %v1646_v40 }
 0x314   : > { %v1599_v48 = vadd.f32 %v1598_v42, %v1597_v38  ;;  %v1604_v43 = vadd.f32 %v1603_v46, %v1602_v45  ;;  %3087 = vmatpush3.bf16.msra.mxu0 %v1040_v36  ;;  %3088 = vmatprep.mubr.msk.bf16.mxu0 %vm3681_vm0, %v3680_v0 }
 0x315   : > { %3098 = vmatprep.subr.bf16.mxu0 %v3680_v0 }
 0x316   : > { %v3376_v4 = vpop.eup %3375  ;;  %v1600_v8 = vrot.slane %v1599_v48, 1  ;;  %v1605_v49 = vrot.slane %v1604_v43, 4 }
 0x317   : > { %v1634_v50 = vmul.f32 %v3376_v4, %v4161_v31  ;;  %v1635_v51 = vmul.f32 %v3376_v4, %v4166_v37  ;;  %v3316_v4 = vld [vmem:[#allocation11 + $0x38] sm:$0xff]  }
 0x318   : > { %v3378_v52 = vpop.eup %3377  ;;  %v1601_v53 = vadd.f32 %v1600_v8, %v1599_v48  ;;  %v1606_v54 = vadd.f32 %v1605_v49, %v1604_v43 }
 0x319   : > { %v3380_v55 = vpop.eup %3379  ;;  %v1611_v56 = vsel %vm1051_vm1, %v3378_v52, 0.0  ;;  %v1647_v58 = vpack.c.bf16 %v1635_v51, %v1634_v50  ;;  %v3317_v51 = vld [vmem:[#allocation11 + $0x30] sm:$0xff]  }
 0x31a   : > { %3383 = vrcp.f32 %v1601_v53  ;;  %v1607_v60 = vrot.slane %v1606_v54, 2  ;;  %v1612_v61 = vsel %vm1051_vm1, %v3380_v55, 0.0 }
 0x31b   : > { %v1613_v63 = vadd.f32 %v1612_v61, %v1611_v56  ;;  %3083 = vmatmul.mubr.msk.bf16.vlgmr.msra.gmra.mxu1 %vm1051_vm1, %v1647_v58  ;;  %v3319_v61 = vld [vmem:[#allocation11 + $0x20] sm:$0xff]  }
 0x31c   : > { %v1608_v2 = vadd.f32 %v1607_v60, %v1606_v54  ;;  %3093 = vmatpush3.bf16.msra.mxu1 %v1043_v1  ;;  %3094 = vmatprep.mubr.msk.bf16.mxu1 %vm3681_vm0, %v3680_v0 }
 0x31d   : > { %v1614_v31 = vrot.slane %v1613_v63, 4  ;;  %3104 = vmatprep.subr.bf16.mxu1 %v3680_v0 }
 0x31e   : > { %v3382_v37 = vpop.eup %3381  ;;  %v1609_v5 = vrot.slane %v1608_v2, 1 }
 0x31f   : > { %v1615_v6 = vadd.f32 %v1614_v31, %v1613_v63  ;;  %v1636_v7 = vmul.f32 %v3382_v37, %v4172_v59  ;;  %v1637_v9 = vmul.f32 %v3382_v37, %v4176_v62  ;;  %v3320_v31 = vld [vmem:[#allocation11 + $0x18] sm:$0xff]  }
 0x320   : > { %v1610_v10 = vadd.f32 %v1609_v5, %v1608_v2 }
 0x321   : > { %v1616_v11 = vrot.slane %v1615_v6, 2  ;;  %v1648_v57 = vpack.c.bf16 %v1637_v9, %v1636_v7 }
 0x322   : > { %3385 = vrcp.f32 %v1610_v10 }
 0x323   : > { %v1617_v12 = vadd.f32 %v1616_v11, %v1615_v6  ;;  %3089 = vmatmul.mubr.msk.bf16.vlgmr.msra.gmra.mxu0 %vm1051_vm1, %v1648_v57  ;;  %v3321_v6 = vld [vmem:[#allocation11 + $0x10] sm:$0xff]   ;;  %v3322_v11 = vld [vmem:[#allocation11 + $0x8] sm:$0xff]  }
 0x324   : > { %3099 = vmatpush3.bf16.msra.mxu0 %v1046_v3  ;;  %3100 = vmatprep.mubr.msk.bf16.mxu0 %vm3681_vm0, %v3680_v0  ;;  %v3323_v3 = vld [vmem:[#allocation11] sm:$0xff]  }
 0x325   : > { %v1618_v13 = vrot.slane %v1617_v12, 1  ;;  %3110 = vmatprep.subr.bf16.mxu0 %v3680_v0 }
 0x327   : > { %v3384_v14 = vpop.eup %3383  ;;  %v1619_v15 = vadd.f32 %v1618_v13, %v1617_v12 }
 0x328   : > { %v1638_v59 = vmul.f32 %v3384_v14, %v4185_v21  ;;  %v1639_v62 = vmul.f32 %v3384_v14, %v4187_v25 }
 0x329   : > { %3387 = vrcp.f32 %v1619_v15 }
 0x32a   : > { %v1649_v16 = vpack.c.bf16 %v1639_v62, %v1638_v59 }
 0x32c   : > { %3095 = vmatmul.mubr.msk.bf16.vlgmr.msra.gmra.mxu1 %vm1051_vm1, %v1649_v16 }
 0x32d   : > { %3105 = vmatpush3.bf16.msra.mxu1 %v1049_v17  ;;  %3106 = vmatprep.mubr.msk.bf16.mxu1 %vm3681_vm0, %v3680_v0 }
 0x32e   : > { %3130 = vmatprep.subr.bf16.mxu1 %v3680_v0 }
 0x32f   : > { %v3386_v18 = vpop.eup %3385 }
 0x330   : > { %v1640_v20 = vmul.f32 %v3386_v18, %v4199_v39  ;;  %v1641_v22 = vmul.f32 %v3386_v18, %v3374_v41 }
 0x332   : > { %v1650_v23 = vpack.c.bf16 %v1641_v22, %v1640_v20 }
 0x334   : > { %3101 = vmatmul.mubr.msk.bf16.vlgmr.msra.gmra.mxu0 %vm1051_vm1, %v1650_v23 }
 0x335   : > { %3126 = vmatprep.mubr.msk.bf16.mxu0 %vm3681_vm0, %v3680_v0  ;;  %3111 = vmatpush3.bf16.msra.mxu0 %v3316_v4 }
 0x336   : > { %v3388_v21 = vpop.eup %3387  ;;  %3112 = vmatprep.subr.bf16.mxu0 %v3680_v0 }
 0x337   : > { %v1642_v24 = vmul.f32 %v3388_v21, %v3378_v52  ;;  %v1643_v25 = vmul.f32 %v3388_v21, %v3380_v55  ;;  %v3318_v55 = vld [vmem:[#allocation11 + $0x28] sm:$0xff]  }
 0x339   : > { %v1651_v26 = vpack.c.bf16 %v1643_v25, %v1642_v24  ;;  %3113 = vmatpush3.bf16.msra.mxu0 %v3317_v51 }
 0x33a   : > { %3114 = vmatprep.subr.bf16.mxu0 %v3680_v0 }
 0x33b   : > { %3107 = vmatmul.mubr.msk.bf16.vlgmr.msra.gmra.mxu1 %vm1051_vm1, %v1651_v26 }
 0x33c   : > { %3146 = vmatprep.mubr.msk.bf16.mxu1 %vm3681_vm0, %v3680_v0 }
 0x33d   : > { %3115 = vmatpush3.bf16.msra.mxu0 %v3318_v55  ;;  %v3327_v55 = vld [vmem:[#allocation12 + $0x28] sm:$0xff]  }
 0x33e   : > { %3116 = vmatprep.subr.bf16.mxu0 %v3680_v0 }
 0x341   : > { %3117 = vmatpush3.bf16.msra.mxu0 %v3319_v61  ;;  %v3331_v61 = vld [vmem:[#allocation12 + $0x8] sm:$0xff]  }
 0x342   : > { %3118 = vmatprep.subr.bf16.mxu0 %v3680_v0 }
 0x345   : > { %3119 = vmatpush3.bf16.msra.mxu0 %v3320_v31 }
 0x346   : > { %3120 = vmatprep.subr.bf16.mxu0 %v3680_v0 }
 0x349   : > { %3121 = vmatpush3.bf16.msra.mxu0 %v3321_v6 }
 0x34a   : > { %3122 = vmatprep.subr.bf16.mxu0 %v3680_v0 }
 0x34d   : > { %3123 = vmatpush3.bf16.msra.mxu0 %v3322_v11 }
 0x34e   : > { %3124 = vmatprep.subr.bf16.mxu0 %v3680_v0 }
 0x351   : > { %3125 = vmatpush3.bf16.msra.mxu0 %v3323_v3  ;;  %v2824_v3 = vld [vmem:[%s4365_s10] ss:$0 sm:$0xff] }
 0x352   : > { %3150 = vmatprep.subr.bf16.mxu0 %v3680_v0 }
 0x359   : > { %v1689_v27 = vpop.f32.mrf.mxu0 }
 0x35a   : > { %v2851_v28 = vpack.c.bf16 %v1689_v27, %v1689_v27 }
 0x35b   : > { %v3066_v19 = vpop.f32.mrf.mxu0 }
 0x35c   : > { %2013 = vst.msk [vmem:[#allocation2] sm:$0xf] %vm2012_vm2, %v2851_v28 }
 0x35d   : > { %v1692_v44 = vpop.f32.mrf.mxu0 }
 0x35e   : > { %v2852_v47 = vpack.c.bf16 %v1692_v44, %v1692_v44 }
 0x35f   : > { %v3067_v29 = vpop.f32.mrf.mxu0 }
 0x360   : > { %2014 = vst.msk [vmem:[#allocation2 + $0x4] sm:$0xf] %vm2012_vm2, %v2852_v47 }
 0x3cc   : > { %v1733_v30 = vpop.f32.mrf.mxu1 }
 0x3cd   : > { %v2853_v32 = vpack.c.bf16 %v1733_v30, %v1733_v30 }
 0x3ce   : > { %v3072_v33 = vpop.f32.mrf.mxu1 }
 0x3cf   : > { %2021 = vrot.lane.b32.xlu1 %v2853_v32, %s3688_s29  ;;  %v2813_v33 = vld [vmem:[%s4363_s8] ss:$0 sm:$0xff] }
 0x3d0   : > { %v1736_v34 = vpop.f32.mrf.mxu1 }
 0x3d1   : > { %v2854_v35 = vpack.c.bf16 %v1736_v34, %v1736_v34 }
 0x3d2   : > { %v3073_v38 = vpop.f32.mrf.mxu1 }
 0x3d3   : > { %2023 = vrot.lane.b32.xlu0 %v2854_v35, %s3688_s29  ;;  %v1777_v39 = vpop.f32.mrf.mxu0  ;;  %s2590_s29 = scalar_lea.sflag [#allocation5], %s3975_s15 }
 0x3d4   : > { %v2855_v40 = vpack.c.bf16 %v1777_v39, %v1777_v39  ;;  %v3405_v39 = vld [vmem:[%s3981_s1] sm:$0xff] }
 0x3d5   : > { %v3078_v41 = vpop.f32.mrf.mxu0 }
 0x3d6   : > { %2036 = vrot.lane.b32.xlu1 %v2855_v40, %s3687_s23 }
 0x3d7   : > { %v1780_v42 = vpop.f32.mrf.mxu0 }
 0x3d8   : > { %v2856_v45 = vpack.c.bf16 %v1780_v42, %v1780_v42 }
 0x3d9   : > { %v3079_v46 = vpop.f32.mrf.mxu0 }
 0x3da   : > { %2038 = vrot.lane.b32.xlu0 %v2856_v45, %s3687_s23  ;;  %v3406_v46 = vld [vmem:[%s3981_s1 + $0x8] sm:$0xff]  ;;  %s4416_s1 = sld [smem:[#allocation31_spill]] }
 0x3db   : > { %v1821_v36 = vpop.f32.mrf.mxu1 }
 0x3dc   : > { %v2857_v48 = vpack.c.bf16 %v1821_v36, %v1821_v36 }
 0x3dd   : > { %v3084_v43 = vpop.f32.mrf.mxu1 }
 0x3de   : > { %2051 = vrot.lane.b32.xlu1 %v2857_v48, %s3686_s17  ;;  %v3325_v48 = vld [vmem:[#allocation12 + $0x38] sm:$0xff]  }
 0x3df   : > { %v1824_v8 = vpop.f32.mrf.mxu1  ;;  %3131 = vmatpush3.bf16.msra.mxu1 %v3325_v48 }
 0x3e0   : > { %v2858_v49 = vpack.c.bf16 %v1824_v8, %v1824_v8  ;;  %3132 = vmatprep.subr.bf16.mxu1 %v3680_v0 }
 0x3e1   : > { %v3085_v50 = vpop.f32.mrf.mxu1 }
 0x3e2   : > { %2053 = vrot.lane.b32.xlu0 %v2858_v49, %s3686_s17  ;;  %s4417_s17 = sld [smem:[#allocation32_spill]] }
 0x3e3   : > { %v1865_v52 = vpop.f32.mrf.mxu0 }
 0x3e4   : > { %v2859_v53 = vpack.c.bf16 %v1865_v52, %v1865_v52 }
 0x3e5   : > { %v3090_v54 = vpop.f32.mrf.mxu0 }
 0x3e6   : > { %2066 = vrot.lane.b32.xlu1 %v2859_v53, %s3685_s18  ;;  %v3326_v54 = vld [vmem:[#allocation12 + $0x30] sm:$0xff]  }
 0x3e7   : > { %v1868_v56 = vpop.f32.mrf.mxu0  ;;  %3133 = vmatpush3.bf16.msra.mxu1 %v3326_v54 }
 0x3e8   : > { %v2860_v58 = vpack.c.bf16 %v1868_v56, %v1868_v56  ;;  %3134 = vmatprep.subr.bf16.mxu1 %v3680_v0  ;;  %v3328_v56 = vld [vmem:[#allocation12 + $0x20] sm:$0xff]   ;;  %s4310_s23 = scalar_lea.hbm %s4417_s17, %s2867_s13 }
 0x3e9   : > { %v3091_v60 = vpop.f32.mrf.mxu0 }
 0x3ea   : > { %2068 = vrot.lane.b32.xlu0 %v2860_v58, %s3685_s18  ;;  %v3329_v58 = vld [vmem:[#allocation12 + $0x18] sm:$0xff]   ;;  %v3330_v60 = vld [vmem:[#allocation12 + $0x10] sm:$0xff]  }
 0x3eb   : > { %3135 = vmatpush3.bf16.msra.mxu1 %v3327_v55 }
 0x3ec   : > { %v1909_v63 = vpop.f32.mrf.mxu1  ;;  %3136 = vmatprep.subr.bf16.mxu1 %v3680_v0 }
 0x3ed   : > { %v2861_v1 = vpack.c.bf16 %v1909_v63, %v1909_v63  ;;  %v3332_v63 = vld [vmem:[#allocation12] sm:$0xff]  }
 0x3ee   : > { %v3096_v2 = vpop.f32.mrf.mxu1 }
 0x3ef   : > { %2081 = vrot.lane.b32.xlu1 %v2861_v1, %s3684_s20  ;;  %3137 = vmatpush3.bf16.msra.mxu1 %v3328_v56 }
 0x3f0   : > { %v1912_v37 = vpop.f32.mrf.mxu1  ;;  %3138 = vmatprep.subr.bf16.mxu1 %v3680_v0 }
 0x3f1   : > { %v2862_v5 = vpack.c.bf16 %v1912_v37, %v1912_v37 }
 0x3f2   : > { %v3097_v7 = vpop.f32.mrf.mxu1 }
 0x3f3   : > { %2083 = vrot.lane.b32.xlu0 %v2862_v5, %s3684_s20  ;;  %3139 = vmatpush3.bf16.msra.mxu1 %v3329_v58 }
 0x3f4   : > { %v1953_v9 = vpop.f32.mrf.mxu0  ;;  %3140 = vmatprep.subr.bf16.mxu1 %v3680_v0 }
 0x3f5   : > { %v2863_v10 = vpack.c.bf16 %v1953_v9, %v1953_v9 }
 0x3f6   : > { %v3102_v57 = vpop.f32.mrf.mxu0 }
 0x3f7   : > { %2096 = vrot.lane.b32.xlu1 %v2863_v10, %s3682_s30  ;;  %3141 = vmatpush3.bf16.msra.mxu1 %v3330_v60  ;;  %v2823_v10 = vld [vmem:[%s4364_s9] ss:$0 sm:$0xff] }
 0x3f8   : > { %v1956_v12 = vpop.f32.mrf.mxu0  ;;  %3142 = vmatprep.subr.bf16.mxu1 %v3680_v0 }
 0x3f9   : > { %v2864_v13 = vpack.c.bf16 %v1956_v12, %v1956_v12 }
 0x3fa   : > { %v3103_v14 = vpop.f32.mrf.mxu0 }
 0x3fb   : > { %2098 = vrot.lane.b32.xlu0 %v2864_v13, %s3682_s30  ;;  %v1997_v15 = vpop.f32.mrf.mxu1  ;;  %3143 = vmatpush3.bf16.msra.mxu1 %v3331_v61  ;;  %s653_s30 = scalar_lea.vmem [#allocation15], %s2746_s26  ;;  %s3595_s26 = sshll.u32 %s3689_s0, 4  ;;  %s3596_s26 = int_to_ptr.vmem [resolvable:$false] %s3595_s26 }
 0x3fc   : > { %v2865_v59 = vpack.c.bf16 %v1997_v15, %v1997_v15  ;;  %3144 = vmatprep.subr.bf16.mxu1 %v3680_v0 }
 0x3fd   : > { %v3108_v62 = vpop.f32.mrf.mxu1 }
 0x3fe   : > { %2111 = vrot.lane.b32.xlu1 %v2865_v59, %s3683_s28  ;;  %v3333_v62 = vld [vmem:[#allocation14 + $0x38] sm:$0xff]  }
 0x3ff   : > { %v2000_v16 = vpop.f32.mrf.mxu1  ;;  %3145 = vmatpush3.bf16.msra.mxu1 %v3332_v63 }
 0x400   : > { %v2866_v17 = vpack.c.bf16 %v2000_v16, %v2000_v16  ;;  %v3334_v16 = vld [vmem:[#allocation14 + $0x30] sm:$0xff]  }
 0x401   : > { %v3109_v18 = vpop.f32.mrf.mxu1 }
 0x402   : > { %2113 = vrot.lane.b32.xlu0 %v2866_v17, %s3683_s28  ;;  %v3335_v17 = vld [vmem:[#allocation14 + $0x28] sm:$0xff]   ;;  %v3336_v18 = vld [vmem:[#allocation14 + $0x20] sm:$0xff]   ;;  %s2603_s28 = sshll.u32 %s653_s30, 4  ;;  %s4312_s28 = int_to_ptr.vmem [resolvable:$true] %s2603_s28 }
 0x403   : > { %s3591_s19 = scalar_lea.vmem %s4312_s28, 256  ;;  %p3598_p13 = scmp.lt.s32.totalorder %s4312_s28, %s3596_s26 }
 0x404   : > { %p3592_p9 = scmp.ne.s32.totalorder %s4312_s28, %s3591_s19 }
 0x406   : > { %p3593_p10 = pnand %p3592_p9, %p4418_p8 }
 0x408   : > { %p3594_p11 = pneg %p3593_p10 }
 0x441   : > { %v2022_v20 = vpop.permute.xlu1 %2021 }
 0x442   : > { %2028 = vst.msk [vmem:[#allocation2] sm:$0xf] %vm2027_vm3, %v2022_v20  ;;  %v3337_v20 = vld [vmem:[#allocation14 + $0x18] sm:$0xff]  }
 0x445   : > { %v2024_v22 = vpop.permute.xlu0 %2023 }
 0x446   : > { %2029 = vst.msk [vmem:[#allocation2 + $0x4] sm:$0xf] %vm2027_vm3, %v2024_v22  ;;  %v3338_v22 = vld [vmem:[#allocation14 + $0x10] sm:$0xff]  }
 0x448   : > { %v2037_v23 = vpop.permute.xlu1 %2036 }
 0x449   : > { %2043 = vst.msk [vmem:[#allocation2] sm:$0xf] %vm2042_vm4, %v2037_v23  ;;  %v3339_v23 = vld [vmem:[#allocation14 + $0x8] sm:$0xff]  }
 0x44c   : > { %v2039_v21 = vpop.permute.xlu0 %2038 }
 0x44d   : > { %2044 = vst.msk [vmem:[#allocation2 + $0x4] sm:$0xf] %vm2042_vm4, %v2039_v21  ;;  %v3340_v21 = vld [vmem:[#allocation14] sm:$0xff]  }
 0x450   : > { %v2052_v24 = vpop.permute.xlu1 %2051 }
 0x451   : > { %2058 = vst.msk [vmem:[#allocation2] sm:$0xf] %vm2057_vm5, %v2052_v24  ;;  %v2825_v24 = vld [vmem:[%s4367_s12] ss:$0 sm:$0xff] }
 0x454   : > { %v2054_v25 = vpop.permute.xlu0 %2053 }
 0x455   : > { %2059 = vst.msk [vmem:[#allocation2 + $0x4] sm:$0xf] %vm2057_vm5, %v2054_v25 }
 0x458   : > { %v2067_v26 = vpop.permute.xlu1 %2066 }
 0x459   : > { %2073 = vst.msk [vmem:[#allocation2] sm:$0xf] %vm2072_vm6, %v2067_v26 }
 0x45c   : > { %v2069_v27 = vpop.permute.xlu0 %2068 }
 0x45d   : > { %2074 = vst.msk [vmem:[#allocation2 + $0x4] sm:$0xf] %vm2072_vm6, %v2069_v27 }
 0x461   : > { %v2082_v28 = vpop.permute.xlu1 %2081 }
 0x462   : > { %2088 = vst.msk [vmem:[#allocation2] sm:$0xf] %vm2087_vm7, %v2082_v28 }
 0x465   : > { %v2084_v19 = vpop.permute.xlu0 %2083 }
 0x466   : > { %2089 = vst.msk [vmem:[#allocation2 + $0x4] sm:$0xf] %vm2087_vm7, %v2084_v19 }
 0x469   : > { %v2097_v44 = vpop.permute.xlu1 %2096 }
 0x46a   : > { %2103 = vst.msk [vmem:[#allocation2] sm:$0xf] %vm2102_vm8, %v2097_v44 }
 0x46d   : > { %v2099_v47 = vpop.permute.xlu0 %2098 }
 0x46e   : > { %2104 = vst.msk [vmem:[#allocation2 + $0x4] sm:$0xf] %vm2102_vm8, %v2099_v47 }
 0x470   : > { %v2112_v29 = vpop.permute.xlu1 %2111 }
 0x471   : > { %2118 = vst.msk [vmem:[#allocation2] sm:$0xf] %vm2117_vm9, %v2112_v29 }
 0x474   : > { %v2114_v30 = vpop.permute.xlu0 %2113 }
 0x475   : > { %2119 = vst.msk [vmem:[#allocation2 + $0x4] sm:$0xf] %vm2117_vm9, %v2114_v30 }
 0x47c   : > { %v3324_v32 = vld [vmem:[#allocation2] sm:$0xff]  }
 0x47d   : > { %3127 = vmatmul.mubr.bf16.vlgmr.msra.gmra.mxu0 %v3324_v32 }
 0x47e   : > { %3166 = vmatprep.mubr.msk.bf16.mxu0 %vm3681_vm0, %v3680_v0  ;;  %3151 = vmatpush3.bf16.msra.mxu0 %v3333_v62 }
 0x47f   : > { %3152 = vmatprep.subr.bf16.mxu0 %v3680_v0 }
 0x482   : > { %3153 = vmatpush3.bf16.msra.mxu0 %v3334_v16 }
 0x483   : > { %3154 = vmatprep.subr.bf16.mxu0 %v3680_v0 }
 0x486   : > { %3155 = vmatpush3.bf16.msra.mxu0 %v3335_v17 }
 0x487   : > { %3156 = vmatprep.subr.bf16.mxu0 %v3680_v0 }
 0x48a   : > { %3157 = vmatpush3.bf16.msra.mxu0 %v3336_v18 }
 0x48b   : > { %3158 = vmatprep.subr.bf16.mxu0 %v3680_v0 }
 0x48e   : > { %3159 = vmatpush3.bf16.msra.mxu0 %v3337_v20 }
 0x48f   : > { %3160 = vmatprep.subr.bf16.mxu0 %v3680_v0 }
 0x492   : > { %3161 = vmatpush3.bf16.msra.mxu0 %v3338_v22 }
 0x493   : > { %3162 = vmatprep.subr.bf16.mxu0 %v3680_v0 }
 0x496   : > { %3163 = vmatpush3.bf16.msra.mxu0 %v3339_v23 }
 0x497   : > { %3164 = vmatprep.subr.bf16.mxu0 %v3680_v0 }
 0x49a   : > { %3165 = vmatpush3.bf16.msra.mxu0 %v3340_v21 }
 0x53d   : > { %v2233_v34 = vpop.f32.mrf.mxu0 }
 0x53e   : > { %v2234_v35 = vadd.f32 %v2813_v33, %v2233_v34 }
 0x53f   : > { %v3128_v38 = vpop.f32.mrf.mxu0 }
 0x540   : > { %v2240_v40 = vadd.f32 %v3405_v39, %v2234_v35 }
 0x541   : > { %v2236_v41 = vpop.f32.mrf.mxu0 }
 0x542   : > { %v2237_v42 = vadd.f32 %v2813_v33, %v2236_v41  ;;  %2244 = vadd.xlane.f32.xlu1 %v2240_v40 }
 0x543   : > { %v3129_v45 = vpop.f32.mrf.mxu0 }
 0x544   : > { %v2241_v36 = vadd.f32 %v3406_v46, %v2237_v42 }
 0x546   : > { %2246 = vadd.xlane.f32.xlu0 %v2241_v36 }
 0x5cb   : > { %v2245_v43 = vpop.xlane.xlu1 %2244 }
 0x5cc   : > { %v2249_v4 = vmul.f32 0.0078125, %v2245_v43 }
 0x5ce   : > { %v2251_v8 = vsub.f32 %v2240_v40, %v2249_v4 }
 0x5cf   : > { %v2247_v49 = vpop.xlane.xlu0 %2246 }
 0x5d0   : > { %v2250_v50 = vmul.f32 0.0078125, %v2247_v49  ;;  %v2253_v51 = vmul.f32 %v2251_v8, %v2251_v8 }
 0x5d2   : > { %v2252_v52 = vsub.f32 %v2241_v36, %v2250_v50  ;;  %2255 = vadd.xlane.f32.xlu0 %v2253_v51 }
 0x5d4   : > { %v2254_v53 = vmul.f32 %v2252_v52, %v2252_v52 }
 0x5d6   : > { %2257 = vadd.xlane.f32.xlu1 %v2254_v53 }
 0x65b   : > { %v2256_v1 = vpop.xlane.xlu0 %2255 }
 0x65c   : > { %v2259_v2 = vmul.f32 0.0078125, %v2256_v1 }
 0x65e   : > { %v2261_v31 = vadd.f32 1e-05, %v2259_v2 }
 0x65f   : > { %v2258_v37 = vpop.xlane.xlu1 %2257 }
 0x660   : > { %3389 = vrsqrt.f32 %v2261_v31  ;;  %v2260_v5 = vmul.f32 0.0078125, %v2258_v37 }
 0x662   : > { %v2262_v6 = vadd.f32 1e-05, %v2260_v5 }
 0x664   : > { %3391 = vrsqrt.f32 %v2262_v6 }
 0x66d   : > { %v3390_v7 = vpop.eup %3389 }
 0x66e   : > { %v2265_v9 = vmul.f32 %v3390_v7, %v2251_v8  ;;  %v2834_v8 = vld [vmem:[%s4369_s14] ss:$0 sm:$0xff] }
 0x670   : > { %v2273_v12 = vmul.f32 %v2823_v10, %v2265_v9 }
 0x671   : > { %v3392_v11 = vpop.eup %3391 }
 0x672   : > { %v2266_v57 = vmul.f32 %v3392_v11, %v2252_v52  ;;  %v4277_v14 = vadd.f32 %v2824_v3, %v2273_v12 }
 0x674   : > { %v2274_v13 = vmul.f32 %v2823_v10, %v2266_v57 }
 0x676   : > { %v4279_v15 = vadd.f32 %v2824_v3, %v2274_v13 }
 0x678   : > { %v2283_v59 = vpack.c.bf16 %v4279_v15, %v4277_v14 }
 0x67a   : > { %3147 = vmatmul.mubr.bf16.vlgmr.msra.gmra.mxu1 %v2283_v59 }
 0x73a   : > { %v2389_v25 = vpop.f32.mrf.mxu1 }
 0x73b   : > { %v2390_v26 = vadd.f32 %v2825_v24, %v2389_v25 }
 0x73c   : > { %v3148_v27 = vpop.f32.mrf.mxu1 }
 0x73d   : > { %v2398_v28 = vmul.f32 0.044715, %v2390_v26  ;;  %v2396_v45 = vmul.f32 0.5, %v2390_v26 }
 0x73e   : > { %v2392_v19 = vpop.f32.mrf.mxu1 }
 0x73f   : > { %v2400_v44 = vmul.f32 %v2398_v28, %v2390_v26  ;;  %v2393_v47 = vadd.f32 %v2825_v24, %v2392_v19  ;;  %v2843_v28 = vld [vmem:[%s4415_s5] ss:$0 sm:$0xff]  ;;  %s3597_s5 = scalar_lea.vmem %s3596_s26, 512 }
 0x740   : > { %v3149_v29 = vpop.f32.mrf.mxu1  ;;  %p3599_p5 = scmp.lt.s32.totalorder %s3597_s5, %s3591_s19 }
 0x741   : > { %v2402_v30 = vmul.f32 %v2400_v44, %v2390_v26  ;;  %v2399_v32 = vmul.f32 0.044715, %v2393_v47  ;;  %v2397_v46 = vmul.f32 0.5, %v2393_v47  ;;  %v2844_v44 = vld [vmem:[%s4416_s1] ss:$0 sm:$0xff] }
 0x742   : > { %p3600_p1 = por %p3599_p5, %p3598_p13 }
 0x743   : > { %v2404_v33 = vadd.f32 %v2402_v30, %v2390_v26  ;;  %v2401_v34 = vmul.f32 %v2399_v32, %v2393_v47 }
 0x744   : > { %p3601_p3 = pnand %p3600_p1, %p3594_p11 }
 0x745   : > { %v2406_v35 = vmul.f32 0.7978846, %v2404_v33  ;;  %v2403_v38 = vmul.f32 %v2401_v34, %v2393_v47 }
 0x747   : > { %3393 = vtanh.f32 %v2406_v35  ;;  %v2405_v0 = vadd.f32 %v2403_v38, %v2393_v47 }
 0x749   : > { %v2407_v39 = vmul.f32 0.7978846, %v2405_v0 }
 0x74b   : > { %3395 = vtanh.f32 %v2407_v39 }
 0x754   : > { %v3394_v40 = vpop.eup %3393 }
 0x755   : > { %v2410_v41 = vadd.f32 1.0, %v3394_v40 }
 0x757   : > { %v2412_v48 = vmul.f32 %v2410_v41, %v2396_v45 }
 0x758   : > { %v3396_v42 = vpop.eup %3395 }
 0x759   : > { %v2411_v36 = vadd.f32 1.0, %v3396_v42 }
 0x75b   : > { %v2413_v43 = vmul.f32 %v2411_v36, %v2397_v46 }
 0x75d   : > { %v2414_v4 = vpack.c.bf16 %v2413_v43, %v2412_v48 }
 0x75f   : > { %3167 = vmatmul.mubr.bf16.vlgmr.msra.gmra.mxu0 %v2414_v4 }
 0x81f   : > { %v2520_v49 = vpop.f32.mrf.mxu0 }
 0x820   : > { %v2521_v50 = vadd.f32 %v2834_v8, %v2520_v49 }
 0x821   : > { %v3168_v51 = vpop.f32.mrf.mxu0 }
 0x822   : > { %v2529_v52 = vmul.f32 0.044715, %v2521_v50  ;;  %v2527_v6 = vmul.f32 0.5, %v2521_v50 }
 0x823   : > { %v2523_v53 = vpop.f32.mrf.mxu0 }
 0x824   : > { %v2531_v54 = vmul.f32 %v2529_v52, %v2521_v50  ;;  %v2524_v55 = vadd.f32 %v2834_v8, %v2523_v53 }
 0x825   : > { %v3169_v56 = vpop.f32.mrf.mxu0 }
 0x826   : > { %v2530_v58 = vmul.f32 0.044715, %v2524_v55  ;;  %v2533_v60 = vmul.f32 %v2531_v54, %v2521_v50  ;;  %v2528_v57 = vmul.f32 0.5, %v2524_v55 }
 0x828   : > { %v2532_v61 = vmul.f32 %v2530_v58, %v2524_v55  ;;  %v2535_v63 = vadd.f32 %v2533_v60, %v2521_v50 }
 0x82a   : > { %v2537_v1 = vmul.f32 0.7978846, %v2535_v63  ;;  %v2534_v2 = vmul.f32 %v2532_v61, %v2524_v55 }
 0x82c   : > { %3397 = vtanh.f32 %v2537_v1  ;;  %v2536_v31 = vadd.f32 %v2534_v2, %v2524_v55 }
 0x82e   : > { %v2538_v37 = vmul.f32 0.7978846, %v2536_v31 }
 0x830   : > { %3399 = vtanh.f32 %v2538_v37 }
 0x839   : > { %v3398_v5 = vpop.eup %3397 }
 0x83a   : > { %v2541_v7 = vadd.f32 1.0, %v3398_v5 }
 0x83c   : > { %v2543_v9 = vmul.f32 %v2541_v7, %v2527_v6 }
 0x83d   : > { %v3400_v10 = vpop.eup %3399 }
 0x83e   : > { %v2545_v11 = vadd.f32 %v2543_v9, %v4277_v14  ;;  %v2542_v12 = vadd.f32 1.0, %v3400_v10 }
 0x840   : > { %2549 = vadd.xlane.f32.xlu0 %v2545_v11  ;;  %v2544_v3 = vmul.f32 %v2542_v12, %v2528_v57 }
 0x842   : > { %v2546_v13 = vadd.f32 %v2544_v3, %v4279_v15 }
 0x844   : > { %2551 = vadd.xlane.f32.xlu1 %v2546_v13 }
 0x8c9   : > { %v2550_v59 = vpop.xlane.xlu0 %2549 }
 0x8ca   : > { %v2553_v62 = vmul.f32 0.0078125, %v2550_v59 }
 0x8cc   : > { %v2555_v16 = vsub.f32 %v2545_v11, %v2553_v62 }
 0x8cd   : > { %v2552_v17 = vpop.xlane.xlu1 %2551 }
 0x8ce   : > { %v2554_v18 = vmul.f32 0.0078125, %v2552_v17  ;;  %v2557_v20 = vmul.f32 %v2555_v16, %v2555_v16 }
 0x8d0   : > { %v2556_v22 = vsub.f32 %v2546_v13, %v2554_v18  ;;  %2559 = vadd.xlane.f32.xlu0 %v2557_v20 }
 0x8d2   : > { %v2558_v23 = vmul.f32 %v2556_v22, %v2556_v22 }
 0x8d4   : > { %2561 = vadd.xlane.f32.xlu1 %v2558_v23 }
 0x959   : > { %v2560_v21 = vpop.xlane.xlu0 %2559 }
 0x95a   : > { %v2563_v14 = vmul.f32 0.0078125, %v2560_v21 }
 0x95c   : > { %v2565_v24 = vadd.f32 1e-05, %v2563_v14 }
 0x95d   : > { %v2562_v25 = vpop.xlane.xlu1 %2561 }
 0x95e   : > { %3401 = vrsqrt.f32 %v2565_v24  ;;  %v2564_v26 = vmul.f32 0.0078125, %v2562_v25 }
 0x960   : > { %v2566_v15 = vadd.f32 1e-05, %v2564_v26 }
 0x962   : > { %3403 = vrsqrt.f32 %v2566_v15 }
 0x96b   : > { %v3402_v27 = vpop.eup %3401 }
 0x96c   : > { %v2569_v19 = vmul.f32 %v3402_v27, %v2555_v16 }
 0x96e   : > { %v2577_v47 = vmul.f32 %v2843_v28, %v2569_v19 }
 0x96f   : > { %v3404_v29 = vpop.eup %3403 }
 0x970   : > { %v2585_v30 = vadd.f32 %v2844_v44, %v2577_v47  ;;  %v2570_v32 = vmul.f32 %v3404_v29, %v2556_v22 }
 0x972   : > { %v2578_v33 = vmul.f32 %v2843_v28, %v2570_v32  ;;  %2587 = vst [vmem:[%s653_s30] sm:$0xff] %v2585_v30 }
 0x974   : > { %v2586_v34 = vadd.f32 %v2844_v44, %v2578_v33 }
 0x976   : > { %2588 = vst [vmem:[%s653_s30 + $0x8] sm:$0xff] %v2586_v34 }
 0x977   : > { %3604 = shalt.err (!%p3601_p3)
}
 0x978   : > { %s3605_s7 = scalar_lea.hbm %s4310_s23, 256  ;;  %s3609_s13 = scalar_lea.hbm %s4417_s17, 512 }
 0x979   : > { %p3606_p4 = scmp.ne.s32.totalorder %s4310_s23, %s3605_s7  ;;  %p3610_p0 = scmp.lt.s32.totalorder %s4310_s23, %s4417_s17 }
 0x97a   : > { %p3611_p7 = scmp.lt.s32.totalorder %s3609_s13, %s3605_s7 }
 0x97b   : > { %p3607_p6 = pnand %p3606_p4, %p4418_p8 }
 0x97c   : > { %p3612_p2 = por %p3611_p7, %p3610_p0 }
 0x97d   : > { %p3608_p12 = pneg %p3607_p6 }
 0x97f   : > { %p3613_p9 = pnand %p3612_p2, %p3608_p12 }
 0x981   : > { %3616 = shalt.err (!%p3613_p9)
}
 0x982   : > { %s3690_s18 = smov 128   ;;  %s3691_s19 = smov 8  }
 0x983   : > { %3196 = dma.vmem_to_hbm [thread:$0]  (%p4418_p8), %s4312_s28, 256, %s4310_s23, %s2590_s29, %s3690_s18, %s3690_s18, %s3691_s19  }
 0x984 PF: > { %s2618_s0 = sand.u32 1, %s3655_s24   ;;  %p4419_p10 = scmp.ne.s32.totalorder %s4404_s21, 0 }
 0x985   : > { %p4420_p11 = scmp.ge.s32.totalorder %s3667_s27, 2  ;;  %s2619_s26 = scalar_lea.sflag [#allocation5], %s2618_s0 }
 0x987   : > { %p3222_p13 = pnand %p4420_p11, %p4419_p10 }
 0x989   : > { %p3223_p5 = pneg %p3222_p13 }
 0x98b   : > { %3650 = dma.done.wait (%p3223_p5), %s2619_s26, 256  }
 0x98c   : > { %3652 = vsyncadd (%p3223_p5), %s2619_s26, 4294967040  ;;  %s4421_s5 = sld [smem:[#allocation21_spill]]  ;;  %p33_p1 = scmp.ge.s32.totalorder %s3903_s22, 4  }
 0x98d   : > { %s4422_s26 = sld [smem:[#allocation22_spill]]  ;;  %s4423_s24 = smov %s3659_s25 }
 0x98e   : > { %s4425_s27 = smov %s3903_s22  ;;  %35 = sbr.rel (!%p33_p1) target bundleno = 19 (0x13), region = 157 }
 0x992   : > { %s4424_s25 = smov %s4421_s5 }
 0x993   :  { %2624 = vsyncpa [#allocation4], 1 }
 0x994   :  { %2626 = vsyncpa [#allocation4 + $0x1], 1 }
 0x995   :  { %2627 = vsyncpa [#allocation7], 1 }
 0x996   :  { %2628 = vsyncpa [#allocation10], 1 }
 0x997   :  { %2629 = vsyncpa [#allocation13], 1 }
 0x998   :  { %2630 = vsyncpa [#allocation5], 1 }
 0x999   :  { %2632 = vsyncpa [#allocation5 + $0x1], 1 }

</bundles_post_ra>
